<compile_context>
chip_gen: v7x
topology: tpu7x:2x2x1
jax: 0.10.0
libtpu: 0.0.40
codegen_flags: <defaults>
</compile_context>

<pallas_src>
import jax
import jax.numpy as jnp
from jax.experimental import pallas as pl
from jax.experimental.pallas import tpu as pltpu


def sentiment_kernel(x_ref, wih_ref, wbd_ref, b_ref,
                     w1_ref, b1_ref, w2_ref, b2_ref, out_ref):
    """Fused biLSTM + Flatten + Linear1 + ReLU + Linear2 + Sigmoid.

    x_ref:   (T*B, E)    bf16  time-major embeddings, rows [t0 b0, t0 b1, t1 b0, ...]
    wih_ref: (E, 8H)     bf16  [W_ih_f^T | W_ih_b^T] combined input->gate weights
    wbd_ref: (2H, 8H)    bf16  block-diagonal [[W_hh_f^T, 0], [0, W_hh_b^T]]
    b_ref:   (1, 8H)     f32   folded LSTM biases, both directions
    w1_ref:  (T*2H, H)   bf16  Linear1 weight transposed (= Flatten contraction)
    b1_ref:  (1, H)      f32
    w2_ref:  (1, H) f32 (C==1 VPU tail)  or  (H, C) bf16 (MXU tail)
    b2_ref:  (1, C)      f32
    out_ref: (B, C)      f32   sigmoid(Linear2(ReLU(Linear1(flatten(lstm_out)))))
    """
    f32 = jnp.float32
    bf16 = jnp.bfloat16
    H = wbd_ref.shape[0] // 2
    B = out_ref.shape[0]
    T = x_ref.shape[0] // B
    C = out_ref.shape[1]

    x = x_ref[...]                                                   # (T*B, E) bf16

    # ---- Combined hoisted input projection (one MXU issue, biases folded in) ----
    xg = jnp.dot(x, wih_ref[...], preferred_element_type=f32) + b_ref[...]   # (T*B, 8H)

    wbd = wbd_ref[...]                                               # (2H, 8H) bf16

    def lstm_cell(gates, c):                                         # PyTorch order i,f,g,o
        i = jax.nn.sigmoid(gates[:, 0 * H:1 * H])
        f = jax.nn.sigmoid(gates[:, 1 * H:2 * H])
        g = jnp.tanh(gates[:, 2 * H:3 * H])
        o = jax.nn.sigmoid(gates[:, 3 * H:4 * H])
        c_new = f * c + i * g
        return o * jnp.tanh(c_new), c_new

    h_f = jnp.zeros((B, H), f32)
    c_f = jnp.zeros((B, H), f32)
    h_b = jnp.zeros((B, H), f32)
    c_b = jnp.zeros((B, H), f32)
    hf_steps = [None] * T   # forward hidden at time t
    hb_steps = [None] * T   # backward hidden at time t

    # Fused fwd/bwd recurrence, fully unrolled (T is small & static). Only the
    # single block-diagonal h @ W_bd matmul remains on the serial critical path.
    # TODO(synk): for production T (>~64) switch to lax.fori_loop(..., unroll=2-4)
    # carrying (h_f,c_f,h_b,c_b) with pl.ds(pl.multiple_of(t*B, B), B) slices of xg
    # to bound vreg live ranges; the Linear1 contraction then becomes a carried acc.
    for s in range(T):
        tf = s
        tb = T - 1 - s
        h_cat = jnp.concatenate([h_f, h_b], axis=1).astype(bf16)     # (B, 2H)
        hh = jnp.dot(h_cat, wbd, preferred_element_type=f32)         # (B, 8H), 1 MXU push
        g_f = xg[tf * B:(tf + 1) * B, 0:4 * H] + hh[:, 0:4 * H]
        g_b = xg[tb * B:(tb + 1) * B, 4 * H:8 * H] + hh[:, 4 * H:8 * H]
        h_f, c_f = lstm_cell(g_f, c_f)
        h_b, c_b = lstm_cell(g_b, c_b)
        hf_steps[tf] = h_f
        hb_steps[tb] = h_b

    # Flatten(start_dim=1) of the (B, T, 2H) packed output + Linear1 as ONE matmul,
    # off the recurrence critical path (far better K-fill than per-step dots).
    hcat = jnp.concatenate(
        [hs for t in range(T) for hs in (hf_steps[t], hb_steps[t])],
        axis=1).astype(bf16)                                          # (B, T*2H)
    d1 = jnp.maximum(
        jnp.dot(hcat, w1_ref[...], preferred_element_type=f32) + b1_ref[...], 0.0)

    if w2_ref.shape[0] == 1 and C == 1:
        # num_classes == 1: VPU multiply + lane reduce instead of an N=1 MXU dot.
        logits = jnp.sum(d1 * w2_ref[...], axis=-1, keepdims=True) + b2_ref[...]
    else:
        logits = jnp.dot(d1.astype(bf16), w2_ref[...],
                         preferred_element_type=f32) + b2_ref[...]
    # TODO(synk): if C grows, lane-pad the output block to a multiple of 128 and
    # slice in the wrapper to keep the out_spec lane-dense.
    out_ref[...] = jax.nn.sigmoid(logits)                             # torch.sigmoid


def prepare_params(params):
    """One-time weight layout work (transposes, casts, weight fusion).

    Call ONCE and reuse across forward calls -- keeps per-call HBM traffic and
    layout ops out of the jitted path (perf-review item)."""
    H = params["w_hh_f"].shape[1]
    C = params["w2"].shape[0]
    f32, bf16 = jnp.float32, jnp.bfloat16

    # Combined input->gate projection, both directions: (E, 8H)
    wih = jnp.concatenate([params["w_ih_f"].T, params["w_ih_b"].T], axis=1).astype(bf16)
    # Folded LSTM biases, both directions: (1, 8H)
    b = jnp.concatenate([params["b_ih_f"] + params["b_hh_f"],
                         params["b_ih_b"] + params["b_hh_b"]]).reshape(1, 8 * H).astype(f32)
    # Block-diagonal hidden->gate weight [[W_hh_f^T, 0], [0, W_hh_b^T]]: (2H, 8H)
    zeros = jnp.zeros((H, 4 * H), f32)
    wbd = jnp.concatenate([
        jnp.concatenate([params["w_hh_f"].T, zeros], axis=1),
        jnp.concatenate([zeros, params["w_hh_b"].T], axis=1)], axis=0).astype(bf16)
    # Linear1: the Flatten(start_dim=1) contraction is exactly w1.T: (T*2H, H)
    w1t = params["w1"].T.astype(bf16)
    b1 = params["b1"].reshape(1, H).astype(f32)
    if C == 1:
        w2 = params["w2"].astype(f32)                 # (1, H) -> VPU tail path
    else:
        w2 = params["w2"].T.astype(bf16)              # (H, C) -> MXU tail path
    b2 = params["b2"].reshape(1, C).astype(f32)
    return {
        "embedding": params["embedding"].astype(bf16),   # bf16 table: no per-call cast
        "wih": wih, "wbd": wbd, "b": b,
        "w1t": w1t, "b1": b1, "w2": w2, "b2": b2,
    }


@jax.jit
def sentiment_forward(tokens, prepared):
    """tokens: (B, T) int32 -> sigmoid outputs (B, num_classes) float32."""
    B, T = tokens.shape
    H = prepared["wbd"].shape[0] // 2
    C = prepared["b2"].shape[1]
    assert prepared["w1t"].shape[0] == T * 2 * H, "seq_len mismatch vs Linear1"

    # Embedding gather + time-major layout (glue).
    # TODO(synk): for large vocab/seq, fuse the gather into the kernel via
    # PrefetchScalarGridSpec(num_scalar_prefetch=1) + pl.Element row-gather with a
    # time-major index_map, dropping this gather + transpose + reshape.
    emb = prepared["embedding"][tokens]                  # (B, T, E) bf16
    x2d = jnp.transpose(emb, (1, 0, 2)).reshape(T * B, -1)

    vmem = pl.BlockSpec(memory_space=pltpu.MemorySpace.VMEM)
    args = (x2d, prepared["wih"], prepared["wbd"], prepared["b"],
            prepared["w1t"], prepared["b1"], prepared["w2"], prepared["b2"])

    # Single grid point: all operands are tiny and fit VMEM with large headroom.
    # TODO(synk): at production sizes add grid=(pl.cdiv(B, TB),) with
    # dimension_semantics=("parallel",) so v7x's two TensorCores split the batch,
    # tile the hoisted xg over T chunks, and set
    # pltpu.CompilerParams(vmem_limit_bytes=...) per generation (v7x: 64 MiB phys).
    return pl.pallas_call(
        sentiment_kernel,
        out_shape=jax.ShapeDtypeStruct((B, C), jnp.float32),
        in_specs=[vmem] * len(args),
        out_specs=vmem,
    )(*args)


def init_params(key, vocab_size, embed_size, hidden_size, num_classes, seq_len):
    """PyTorch-equivalent initialization, stored in PyTorch weight layouts."""
    ks = jax.random.split(key, 13)
    H = hidden_size
    mid = seq_len * 2 * H
    b_lstm = 1.0 / float(H) ** 0.5
    b_l1 = 1.0 / float(mid) ** 0.5
    b_l2 = 1.0 / float(H) ** 0.5

    def u(k, shape, b):
        return jax.random.uniform(k, shape, jnp.float32, -b, b)

    return {
        # nn.Embedding: N(0, 1)
        "embedding": jax.random.normal(ks[0], (vocab_size, embed_size), jnp.float32),
        # nn.LSTM forward direction
        "w_ih_f": u(ks[1], (4 * H, embed_size), b_lstm),
        "w_hh_f": u(ks[2], (4 * H, H), b_lstm),
        "b_ih_f": u(ks[3], (4 * H,), b_lstm),
        "b_hh_f": u(ks[4], (4 * H,), b_lstm),
        # nn.LSTM reverse direction
        "w_ih_b": u(ks[5], (4 * H, embed_size), b_lstm),
        "w_hh_b": u(ks[6], (4 * H, H), b_lstm),
        "b_ih_b": u(ks[7], (4 * H,), b_lstm),
        "b_hh_b": u(ks[8], (4 * H,), b_lstm),
        # nn.Linear(seq_len*2H, H)
        "w1": u(ks[9], (H, mid), b_l1),
        "b1": u(ks[10], (H,), b_l1),
        # nn.Linear(H, num_classes)
        "w2": u(ks[11], (num_classes, H), b_l2),
        "b2": u(ks[12], (num_classes,), b_l2),
    }


if __name__ == "__main__":
    vocab_size, embed_size, hidden_size, num_classes, seq_len = 50, 16, 32, 1, 8
    batch = 2

    key = jax.random.PRNGKey(0)
    pkey, tkey = jax.random.split(key)
    params = init_params(pkey, vocab_size, embed_size, hidden_size, num_classes, seq_len)
    prepared = prepare_params(params)       # one-time layout work, reused per call
    tokens = jax.random.randint(tkey, (batch, seq_len), 0, vocab_size, dtype=jnp.int32)

    out = sentiment_forward(tokens, prepared)
    jax.block_until_ready(out)
    assert out.shape == (batch, num_classes)
    assert out.dtype == jnp.float32
    assert bool(jnp.all(jnp.isfinite(out)))
    assert bool(jnp.all((out >= 0.0) & (out <= 1.0)))   # sigmoid range
    print("KERNEL_OK")
</pallas_src>

<mosaic_0001>
module attributes {stable_mosaic.version = 11 : i64} {
  func.func @sentiment_kernel(%arg0: memref<16x16xbf16, #tpu.memory_space<vmem>>, %arg1: memref<16x256xbf16, #tpu.memory_space<vmem>>, %arg2: memref<64x256xbf16, #tpu.memory_space<vmem>>, %arg3: memref<1x256xf32, #tpu.memory_space<vmem>>, %arg4: memref<512x32xbf16, #tpu.memory_space<vmem>>, %arg5: memref<1x32xf32, #tpu.memory_space<vmem>>, %arg6: memref<1x32xf32, #tpu.memory_space<vmem>>, %arg7: memref<1x1xf32, #tpu.memory_space<vmem>>, %arg8: memref<2x1xf32, #tpu.memory_space<vmem>>) attributes {dimension_semantics = [], scalar_prefetch = 0 : i64, scratch_operands = 0 : i64, tpu.core_type = #tpu.core_type<tc>} {
    %c0 = arith.constant 0 : index
    %c0_0 = arith.constant 0 : index
    %0 = vector.load %arg0[%c0, %c0_0] : memref<16x16xbf16, #tpu.memory_space<vmem>>, vector<16x16xbf16>
    %c0_1 = arith.constant 0 : index
    %c0_2 = arith.constant 0 : index
    %1 = vector.load %arg1[%c0_1, %c0_2] : memref<16x256xbf16, #tpu.memory_space<vmem>>, vector<16x256xbf16>
    %cst = arith.constant dense<0.000000e+00> : vector<16x256xf32>
    %2 = tpu.matmul %0, %1, %cst {dimension_numbers = #tpu.dot_dimension_numbers<[1], [0], [0], [1], [0, 0, 1, 1], [], []>} : vector<16x16xbf16>, vector<16x256xbf16>, vector<16x256xf32> -> vector<16x256xf32>
    %c0_3 = arith.constant 0 : index
    %c0_4 = arith.constant 0 : index
    %3 = vector.load %arg3[%c0_3, %c0_4] : memref<1x256xf32, #tpu.memory_space<vmem>>, vector<1x256xf32>
    %4 = vector.broadcast %3 : vector<1x256xf32> to vector<16x256xf32>
    %5 = arith.addf %2, %4 : vector<16x256xf32>
    %c0_5 = arith.constant 0 : index
    %c0_6 = arith.constant 0 : index
    %6 = vector.load %arg2[%c0_5, %c0_6] : memref<64x256xbf16, #tpu.memory_space<vmem>>, vector<64x256xbf16>
    %cst_7 = arith.constant 0.000000e+00 : f32
    %7 = vector.broadcast %cst_7 : f32 to vector<2x32xf32>
    %cst_8 = arith.constant 0.000000e+00 : f32
    %8 = vector.broadcast %cst_8 : f32 to vector<2x32xf32>
    %cst_9 = arith.constant 0.000000e+00 : f32
    %9 = vector.broadcast %cst_9 : f32 to vector<2x32xf32>
    %cst_10 = arith.constant 0.000000e+00 : f32
    %10 = vector.broadcast %cst_10 : f32 to vector<2x32xf32>
    %11 = tpu.concatenate %7, %9 in 1 : vector<2x32xf32>, vector<2x32xf32> -> vector<2x64xf32>
    %12 = arith.truncf %11 : vector<2x64xf32> to vector<2x64xbf16>
    %cst_11 = arith.constant dense<0.000000e+00> : vector<2x256xf32>
    %13 = tpu.matmul %12, %6, %cst_11 {dimension_numbers = #tpu.dot_dimension_numbers<[1], [0], [0], [1], [0, 0, 1, 1], [], []>} : vector<2x64xbf16>, vector<64x256xbf16>, vector<2x256xf32> -> vector<2x256xf32>
    %14 = vector.extract_strided_slice %5 {offsets = [0, 0], sizes = [2, 128], strides = [1, 1]} : vector<16x256xf32> to vector<2x128xf32>
    %15 = vector.extract_strided_slice %13 {offsets = [0, 0], sizes = [2, 128], strides = [1, 1]} : vector<2x256xf32> to vector<2x128xf32>
    %16 = arith.addf %14, %15 : vector<2x128xf32>
    %17 = vector.extract_strided_slice %5 {offsets = [14, 128], sizes = [2, 128], strides = [1, 1]} : vector<16x256xf32> to vector<2x128xf32>
    %18 = vector.extract_strided_slice %13 {offsets = [0, 128], sizes = [2, 128], strides = [1, 1]} : vector<2x256xf32> to vector<2x128xf32>
    %19 = arith.addf %17, %18 : vector<2x128xf32>
    %20 = vector.extract_strided_slice %16 {offsets = [0, 0], sizes = [2, 32], strides = [1, 1]} : vector<2x128xf32> to vector<2x32xf32>
    %21 = arith.negf %20 : vector<2x32xf32>
    %22 = math.exp %21 : vector<2x32xf32>
    %cst_12 = arith.constant 1.000000e+00 : f32
    %23 = vector.broadcast %cst_12 : f32 to vector<2x32xf32>
    %24 = arith.addf %23, %22 : vector<2x32xf32>
    %25 = arith.divf %23, %24 : vector<2x32xf32>
    %26 = vector.extract_strided_slice %16 {offsets = [0, 32], sizes = [2, 32], strides = [1, 1]} : vector<2x128xf32> to vector<2x32xf32>
    %27 = arith.negf %26 : vector<2x32xf32>
    %28 = math.exp %27 : vector<2x32xf32>
    %cst_13 = arith.constant 1.000000e+00 : f32
    %29 = vector.broadcast %cst_13 : f32 to vector<2x32xf32>
    %30 = arith.addf %29, %28 : vector<2x32xf32>
    %31 = arith.divf %29, %30 : vector<2x32xf32>
    %32 = vector.extract_strided_slice %16 {offsets = [0, 64], sizes = [2, 32], strides = [1, 1]} : vector<2x128xf32> to vector<2x32xf32>
    %33 = math.tanh %32 : vector<2x32xf32>
    %34 = vector.extract_strided_slice %16 {offsets = [0, 96], sizes = [2, 32], strides = [1, 1]} : vector<2x128xf32> to vector<2x32xf32>
    %35 = arith.negf %34 : vector<2x32xf32>
    %36 = math.exp %35 : vector<2x32xf32>
    %cst_14 = arith.constant 1.000000e+00 : f32
    %37 = vector.broadcast %cst_14 : f32 to vector<2x32xf32>
    %38 = arith.addf %37, %36 : vector<2x32xf32>
    %39 = arith.divf %37, %38 : vector<2x32xf32>
    %40 = arith.mulf %31, %8 : vector<2x32xf32>
    %41 = arith.mulf %25, %33 : vector<2x32xf32>
    %42 = arith.addf %40, %41 : vector<2x32xf32>
    %43 = math.tanh %42 : vector<2x32xf32>
    %44 = arith.mulf %39, %43 : vector<2x32xf32>
    %45 = vector.extract_strided_slice %19 {offsets = [0, 0], sizes = [2, 32], strides = [1, 1]} : vector<2x128xf32> to vector<2x32xf32>
    %46 = arith.negf %45 : vector<2x32xf32>
    %47 = math.exp %46 : vector<2x32xf32>
    %cst_15 = arith.constant 1.000000e+00 : f32
    %48 = vector.broadcast %cst_15 : f32 to vector<2x32xf32>
    %49 = arith.addf %48, %47 : vector<2x32xf32>
    %50 = arith.divf %48, %49 : vector<2x32xf32>
    %51 = vector.extract_strided_slice %19 {offsets = [0, 32], sizes = [2, 32], strides = [1, 1]} : vector<2x128xf32> to vector<2x32xf32>
    %52 = arith.negf %51 : vector<2x32xf32>
    %53 = math.exp %52 : vector<2x32xf32>
    %cst_16 = arith.constant 1.000000e+00 : f32
    %54 = vector.broadcast %cst_16 : f32 to vector<2x32xf32>
    %55 = arith.addf %54, %53 : vector<2x32xf32>
    %56 = arith.divf %54, %55 : vector<2x32xf32>
    %57 = vector.extract_strided_slice %19 {offsets = [0, 64], sizes = [2, 32], strides = [1, 1]} : vector<2x128xf32> to vector<2x32xf32>
    %58 = math.tanh %57 : vector<2x32xf32>
    %59 = vector.extract_strided_slice %19 {offsets = [0, 96], sizes = [2, 32], strides = [1, 1]} : vector<2x128xf32> to vector<2x32xf32>
    %60 = arith.negf %59 : vector<2x32xf32>
    %61 = math.exp %60 : vector<2x32xf32>
    %cst_17 = arith.constant 1.000000e+00 : f32
    %62 = vector.broadcast %cst_17 : f32 to vector<2x32xf32>
    %63 = arith.addf %62, %61 : vector<2x32xf32>
    %64 = arith.divf %62, %63 : vector<2x32xf32>
    %65 = arith.mulf %56, %10 : vector<2x32xf32>
    %66 = arith.mulf %50, %58 : vector<2x32xf32>
    %67 = arith.addf %65, %66 : vector<2x32xf32>
    %68 = math.tanh %67 : vector<2x32xf32>
    %69 = arith.mulf %64, %68 : vector<2x32xf32>
    %70 = tpu.concatenate %44, %69 in 1 : vector<2x32xf32>, vector<2x32xf32> -> vector<2x64xf32>
    %71 = arith.truncf %70 : vector<2x64xf32> to vector<2x64xbf16>
    %cst_18 = arith.constant dense<0.000000e+00> : vector<2x256xf32>
    %72 = tpu.matmul %71, %6, %cst_18 {dimension_numbers = #tpu.dot_dimension_numbers<[1], [0], [0], [1], [0, 0, 1, 1], [], []>} : vector<2x64xbf16>, vector<64x256xbf16>, vector<2x256xf32> -> vector<2x256xf32>
    %73 = vector.extract_strided_slice %5 {offsets = [2, 0], sizes = [2, 128], strides = [1, 1]} : vector<16x256xf32> to vector<2x128xf32>
    %74 = vector.extract_strided_slice %72 {offsets = [0, 0], sizes = [2, 128], strides = [1, 1]} : vector<2x256xf32> to vector<2x128xf32>
    %75 = arith.addf %73, %74 : vector<2x128xf32>
    %76 = vector.extract_strided_slice %5 {offsets = [12, 128], sizes = [2, 128], strides = [1, 1]} : vector<16x256xf32> to vector<2x128xf32>
    %77 = vector.extract_strided_slice %72 {offsets = [0, 128], sizes = [2, 128], strides = [1, 1]} : vector<2x256xf32> to vector<2x128xf32>
    %78 = arith.addf %76, %77 : vector<2x128xf32>
    %79 = vector.extract_strided_slice %75 {offsets = [0, 0], sizes = [2, 32], strides = [1, 1]} : vector<2x128xf32> to vector<2x32xf32>
    %80 = arith.negf %79 : vector<2x32xf32>
    %81 = math.exp %80 : vector<2x32xf32>
    %cst_19 = arith.constant 1.000000e+00 : f32
    %82 = vector.broadcast %cst_19 : f32 to vector<2x32xf32>
    %83 = arith.addf %82, %81 : vector<2x32xf32>
    %84 = arith.divf %82, %83 : vector<2x32xf32>
    %85 = vector.extract_strided_slice %75 {offsets = [0, 32], sizes = [2, 32], strides = [1, 1]} : vector<2x128xf32> to vector<2x32xf32>
    %86 = arith.negf %85 : vector<2x32xf32>
    %87 = math.exp %86 : vector<2x32xf32>
    %cst_20 = arith.constant 1.000000e+00 : f32
    %88 = vector.broadcast %cst_20 : f32 to vector<2x32xf32>
    %89 = arith.addf %88, %87 : vector<2x32xf32>
    %90 = arith.divf %88, %89 : vector<2x32xf32>
    %91 = vector.extract_strided_slice %75 {offsets = [0, 64], sizes = [2, 32], strides = [1, 1]} : vector<2x128xf32> to vector<2x32xf32>
    %92 = math.tanh %91 : vector<2x32xf32>
    %93 = vector.extract_strided_slice %75 {offsets = [0, 96], sizes = [2, 32], strides = [1, 1]} : vector<2x128xf32> to vector<2x32xf32>
    %94 = arith.negf %93 : vector<2x32xf32>
    %95 = math.exp %94 : vector<2x32xf32>
    %cst_21 = arith.constant 1.000000e+00 : f32
    %96 = vector.broadcast %cst_21 : f32 to vector<2x32xf32>
    %97 = arith.addf %96, %95 : vector<2x32xf32>
    %98 = arith.divf %96, %97 : vector<2x32xf32>
    %99 = arith.mulf %90, %42 : vector<2x32xf32>
    %100 = arith.mulf %84, %92 : vector<2x32xf32>
    %101 = arith.addf %99, %100 : vector<2x32xf32>
    %102 = math.tanh %101 : vector<2x32xf32>
    %103 = arith.mulf %98, %102 : vector<2x32xf32>
    %104 = vector.extract_strided_slice %78 {offsets = [0, 0], sizes = [2, 32], strides = [1, 1]} : vector<2x128xf32> to vector<2x32xf32>
    %105 = arith.negf %104 : vector<2x32xf32>
    %106 = math.exp %105 : vector<2x32xf32>
    %cst_22 = arith.constant 1.000000e+00 : f32
    %107 = vector.broadcast %cst_22 : f32 to vector<2x32xf32>
    %108 = arith.addf %107, %106 : vector<2x32xf32>
    %109 = arith.divf %107, %108 : vector<2x32xf32>
    %110 = vector.extract_strided_slice %78 {offsets = [0, 32], sizes = [2, 32], strides = [1, 1]} : vector<2x128xf32> to vector<2x32xf32>
    %111 = arith.negf %110 : vector<2x32xf32>
    %112 = math.exp %111 : vector<2x32xf32>
    %cst_23 = arith.constant 1.000000e+00 : f32
    %113 = vector.broadcast %cst_23 : f32 to vector<2x32xf32>
    %114 = arith.addf %113, %112 : vector<2x32xf32>
    %115 = arith.divf %113, %114 : vector<2x32xf32>
    %116 = vector.extract_strided_slice %78 {offsets = [0, 64], sizes = [2, 32], strides = [1, 1]} : vector<2x128xf32> to vector<2x32xf32>
    %117 = math.tanh %116 : vector<2x32xf32>
    %118 = vector.extract_strided_slice %78 {offsets = [0, 96], sizes = [2, 32], strides = [1, 1]} : vector<2x128xf32> to vector<2x32xf32>
    %119 = arith.negf %118 : vector<2x32xf32>
    %120 = math.exp %119 : vector<2x32xf32>
    %cst_24 = arith.constant 1.000000e+00 : f32
    %121 = vector.broadcast %cst_24 : f32 to vector<2x32xf32>
    %122 = arith.addf %121, %120 : vector<2x32xf32>
    %123 = arith.divf %121, %122 : vector<2x32xf32>
    %124 = arith.mulf %115, %67 : vector<2x32xf32>
    %125 = arith.mulf %109, %117 : vector<2x32xf32>
    %126 = arith.addf %124, %125 : vector<2x32xf32>
    %127 = math.tanh %126 : vector<2x32xf32>
    %128 = arith.mulf %123, %127 : vector<2x32xf32>
    %129 = tpu.concatenate %103, %128 in 1 : vector<2x32xf32>, vector<2x32xf32> -> vector<2x64xf32>
    %130 = arith.truncf %129 : vector<2x64xf32> to vector<2x64xbf16>
    %cst_25 = arith.constant dense<0.000000e+00> : vector<2x256xf32>
    %131 = tpu.matmul %130, %6, %cst_25 {dimension_numbers = #tpu.dot_dimension_numbers<[1], [0], [0], [1], [0, 0, 1, 1], [], []>} : vector<2x64xbf16>, vector<64x256xbf16>, vector<2x256xf32> -> vector<2x256xf32>
    %132 = vector.extract_strided_slice %5 {offsets = [4, 0], sizes = [2, 128], strides = [1, 1]} : vector<16x256xf32> to vector<2x128xf32>
    %133 = vector.extract_strided_slice %131 {offsets = [0, 0], sizes = [2, 128], strides = [1, 1]} : vector<2x256xf32> to vector<2x128xf32>
    %134 = arith.addf %132, %133 : vector<2x128xf32>
    %135 = vector.extract_strided_slice %5 {offsets = [10, 128], sizes = [2, 128], strides = [1, 1]} : vector<16x256xf32> to vector<2x128xf32>
    %136 = vector.extract_strided_slice %131 {offsets = [0, 128], sizes = [2, 128], strides = [1, 1]} : vector<2x256xf32> to vector<2x128xf32>
    %137 = arith.addf %135, %136 : vector<2x128xf32>
    %138 = vector.extract_strided_slice %134 {offsets = [0, 0], sizes = [2, 32], strides = [1, 1]} : vector<2x128xf32> to vector<2x32xf32>
    %139 = arith.negf %138 : vector<2x32xf32>
    %140 = math.exp %139 : vector<2x32xf32>
    %cst_26 = arith.constant 1.000000e+00 : f32
    %141 = vector.broadcast %cst_26 : f32 to vector<2x32xf32>
    %142 = arith.addf %141, %140 : vector<2x32xf32>
    %143 = arith.divf %141, %142 : vector<2x32xf32>
    %144 = vector.extract_strided_slice %134 {offsets = [0, 32], sizes = [2, 32], strides = [1, 1]} : vector<2x128xf32> to vector<2x32xf32>
    %145 = arith.negf %144 : vector<2x32xf32>
    %146 = math.exp %145 : vector<2x32xf32>
    %cst_27 = arith.constant 1.000000e+00 : f32
    %147 = vector.broadcast %cst_27 : f32 to vector<2x32xf32>
    %148 = arith.addf %147, %146 : vector<2x32xf32>
    %149 = arith.divf %147, %148 : vector<2x32xf32>
    %150 = vector.extract_strided_slice %134 {offsets = [0, 64], sizes = [2, 32], strides = [1, 1]} : vector<2x128xf32> to vector<2x32xf32>
    %151 = math.tanh %150 : vector<2x32xf32>
    %152 = vector.extract_strided_slice %134 {offsets = [0, 96], sizes = [2, 32], strides = [1, 1]} : vector<2x128xf32> to vector<2x32xf32>
    %153 = arith.negf %152 : vector<2x32xf32>
    %154 = math.exp %153 : vector<2x32xf32>
    %cst_28 = arith.constant 1.000000e+00 : f32
    %155 = vector.broadcast %cst_28 : f32 to vector<2x32xf32>
    %156 = arith.addf %155, %154 : vector<2x32xf32>
    %157 = arith.divf %155, %156 : vector<2x32xf32>
    %158 = arith.mulf %149, %101 : vector<2x32xf32>
    %159 = arith.mulf %143, %151 : vector<2x32xf32>
    %160 = arith.addf %158, %159 : vector<2x32xf32>
    %161 = math.tanh %160 : vector<2x32xf32>
    %162 = arith.mulf %157, %161 : vector<2x32xf32>
    %163 = vector.extract_strided_slice %137 {offsets = [0, 0], sizes = [2, 32], strides = [1, 1]} : vector<2x128xf32> to vector<2x32xf32>
    %164 = arith.negf %163 : vector<2x32xf32>
    %165 = math.exp %164 : vector<2x32xf32>
    %cst_29 = arith.constant 1.000000e+00 : f32
    %166 = vector.broadcast %cst_29 : f32 to vector<2x32xf32>
    %167 = arith.addf %166, %165 : vector<2x32xf32>
    %168 = arith.divf %166, %167 : vector<2x32xf32>
    %169 = vector.extract_strided_slice %137 {offsets = [0, 32], sizes = [2, 32], strides = [1, 1]} : vector<2x128xf32> to vector<2x32xf32>
    %170 = arith.negf %169 : vector<2x32xf32>
    %171 = math.exp %170 : vector<2x32xf32>
    %cst_30 = arith.constant 1.000000e+00 : f32
    %172 = vector.broadcast %cst_30 : f32 to vector<2x32xf32>
    %173 = arith.addf %172, %171 : vector<2x32xf32>
    %174 = arith.divf %172, %173 : vector<2x32xf32>
    %175 = vector.extract_strided_slice %137 {offsets = [0, 64], sizes = [2, 32], strides = [1, 1]} : vector<2x128xf32> to vector<2x32xf32>
    %176 = math.tanh %175 : vector<2x32xf32>
    %177 = vector.extract_strided_slice %137 {offsets = [0, 96], sizes = [2, 32], strides = [1, 1]} : vector<2x128xf32> to vector<2x32xf32>
    %178 = arith.negf %177 : vector<2x32xf32>
    %179 = math.exp %178 : vector<2x32xf32>
    %cst_31 = arith.constant 1.000000e+00 : f32
    %180 = vector.broadcast %cst_31 : f32 to vector<2x32xf32>
    %181 = arith.addf %180, %179 : vector<2x32xf32>
    %182 = arith.divf %180, %181 : vector<2x32xf32>
    %183 = arith.mulf %174, %126 : vector<2x32xf32>
    %184 = arith.mulf %168, %176 : vector<2x32xf32>
    %185 = arith.addf %183, %184 : vector<2x32xf32>
    %186 = math.tanh %185 : vector<2x32xf32>
    %187 = arith.mulf %182, %186 : vector<2x32xf32>
    %188 = tpu.concatenate %162, %187 in 1 : vector<2x32xf32>, vector<2x32xf32> -> vector<2x64xf32>
    %189 = arith.truncf %188 : vector<2x64xf32> to vector<2x64xbf16>
    %cst_32 = arith.constant dense<0.000000e+00> : vector<2x256xf32>
    %190 = tpu.matmul %189, %6, %cst_32 {dimension_numbers = #tpu.dot_dimension_numbers<[1], [0], [0], [1], [0, 0, 1, 1], [], []>} : vector<2x64xbf16>, vector<64x256xbf16>, vector<2x256xf32> -> vector<2x256xf32>
    %191 = vector.extract_strided_slice %5 {offsets = [6, 0], sizes = [2, 128], strides = [1, 1]} : vector<16x256xf32> to vector<2x128xf32>
    %192 = vector.extract_strided_slice %190 {offsets = [0, 0], sizes = [2, 128], strides = [1, 1]} : vector<2x256xf32> to vector<2x128xf32>
    %193 = arith.addf %191, %192 : vector<2x128xf32>
    %194 = vector.extract_strided_slice %5 {offsets = [8, 128], sizes = [2, 128], strides = [1, 1]} : vector<16x256xf32> to vector<2x128xf32>
    %195 = vector.extract_strided_slice %190 {offsets = [0, 128], sizes = [2, 128], strides = [1, 1]} : vector<2x256xf32> to vector<2x128xf32>
    %196 = arith.addf %194, %195 : vector<2x128xf32>
    %197 = vector.extract_strided_slice %193 {offsets = [0, 0], sizes = [2, 32], strides = [1, 1]} : vector<2x128xf32> to vector<2x32xf32>
    %198 = arith.negf %197 : vector<2x32xf32>
    %199 = math.exp %198 : vector<2x32xf32>
    %cst_33 = arith.constant 1.000000e+00 : f32
    %200 = vector.broadcast %cst_33 : f32 to vector<2x32xf32>
    %201 = arith.addf %200, %199 : vector<2x32xf32>
    %202 = arith.divf %200, %201 : vector<2x32xf32>
    %203 = vector.extract_strided_slice %193 {offsets = [0, 32], sizes = [2, 32], strides = [1, 1]} : vector<2x128xf32> to vector<2x32xf32>
    %204 = arith.negf %203 : vector<2x32xf32>
    %205 = math.exp %204 : vector<2x32xf32>
    %cst_34 = arith.constant 1.000000e+00 : f32
    %206 = vector.broadcast %cst_34 : f32 to vector<2x32xf32>
    %207 = arith.addf %206, %205 : vector<2x32xf32>
    %208 = arith.divf %206, %207 : vector<2x32xf32>
    %209 = vector.extract_strided_slice %193 {offsets = [0, 64], sizes = [2, 32], strides = [1, 1]} : vector<2x128xf32> to vector<2x32xf32>
    %210 = math.tanh %209 : vector<2x32xf32>
    %211 = vector.extract_strided_slice %193 {offsets = [0, 96], sizes = [2, 32], strides = [1, 1]} : vector<2x128xf32> to vector<2x32xf32>
    %212 = arith.negf %211 : vector<2x32xf32>
    %213 = math.exp %212 : vector<2x32xf32>
    %cst_35 = arith.constant 1.000000e+00 : f32
    %214 = vector.broadcast %cst_35 : f32 to vector<2x32xf32>
    %215 = arith.addf %214, %213 : vector<2x32xf32>
    %216 = arith.divf %214, %215 : vector<2x32xf32>
    %217 = arith.mulf %208, %160 : vector<2x32xf32>
    %218 = arith.mulf %202, %210 : vector<2x32xf32>
    %219 = arith.addf %217, %218 : vector<2x32xf32>
    %220 = math.tanh %219 : vector<2x32xf32>
    %221 = arith.mulf %216, %220 : vector<2x32xf32>
    %222 = vector.extract_strided_slice %196 {offsets = [0, 0], sizes = [2, 32], strides = [1, 1]} : vector<2x128xf32> to vector<2x32xf32>
    %223 = arith.negf %222 : vector<2x32xf32>
    %224 = math.exp %223 : vector<2x32xf32>
    %cst_36 = arith.constant 1.000000e+00 : f32
    %225 = vector.broadcast %cst_36 : f32 to vector<2x32xf32>
    %226 = arith.addf %225, %224 : vector<2x32xf32>
    %227 = arith.divf %225, %226 : vector<2x32xf32>
    %228 = vector.extract_strided_slice %196 {offsets = [0, 32], sizes = [2, 32], strides = [1, 1]} : vector<2x128xf32> to vector<2x32xf32>
    %229 = arith.negf %228 : vector<2x32xf32>
    %230 = math.exp %229 : vector<2x32xf32>
    %cst_37 = arith.constant 1.000000e+00 : f32
    %231 = vector.broadcast %cst_37 : f32 to vector<2x32xf32>
    %232 = arith.addf %231, %230 : vector<2x32xf32>
    %233 = arith.divf %231, %232 : vector<2x32xf32>
    %234 = vector.extract_strided_slice %196 {offsets = [0, 64], sizes = [2, 32], strides = [1, 1]} : vector<2x128xf32> to vector<2x32xf32>
    %235 = math.tanh %234 : vector<2x32xf32>
    %236 = vector.extract_strided_slice %196 {offsets = [0, 96], sizes = [2, 32], strides = [1, 1]} : vector<2x128xf32> to vector<2x32xf32>
    %237 = arith.negf %236 : vector<2x32xf32>
    %238 = math.exp %237 : vector<2x32xf32>
    %cst_38 = arith.constant 1.000000e+00 : f32
    %239 = vector.broadcast %cst_38 : f32 to vector<2x32xf32>
    %240 = arith.addf %239, %238 : vector<2x32xf32>
    %241 = arith.divf %239, %240 : vector<2x32xf32>
    %242 = arith.mulf %233, %185 : vector<2x32xf32>
    %243 = arith.mulf %227, %235 : vector<2x32xf32>
    %244 = arith.addf %242, %243 : vector<2x32xf32>
    %245 = math.tanh %244 : vector<2x32xf32>
    %246 = arith.mulf %241, %245 : vector<2x32xf32>
    %247 = tpu.concatenate %221, %246 in 1 : vector<2x32xf32>, vector<2x32xf32> -> vector<2x64xf32>
    %248 = arith.truncf %247 : vector<2x64xf32> to vector<2x64xbf16>
    %cst_39 = arith.constant dense<0.000000e+00> : vector<2x256xf32>
    %249 = tpu.matmul %248, %6, %cst_39 {dimension_numbers = #tpu.dot_dimension_numbers<[1], [0], [0], [1], [0, 0, 1, 1], [], []>} : vector<2x64xbf16>, vector<64x256xbf16>, vector<2x256xf32> -> vector<2x256xf32>
    %250 = vector.extract_strided_slice %5 {offsets = [8, 0], sizes = [2, 128], strides = [1, 1]} : vector<16x256xf32> to vector<2x128xf32>
    %251 = vector.extract_strided_slice %249 {offsets = [0, 0], sizes = [2, 128], strides = [1, 1]} : vector<2x256xf32> to vector<2x128xf32>
    %252 = arith.addf %250, %251 : vector<2x128xf32>
    %253 = vector.extract_strided_slice %5 {offsets = [6, 128], sizes = [2, 128], strides = [1, 1]} : vector<16x256xf32> to vector<2x128xf32>
    %254 = vector.extract_strided_slice %249 {offsets = [0, 128], sizes = [2, 128], strides = [1, 1]} : vector<2x256xf32> to vector<2x128xf32>
    %255 = arith.addf %253, %254 : vector<2x128xf32>
    %256 = vector.extract_strided_slice %252 {offsets = [0, 0], sizes = [2, 32], strides = [1, 1]} : vector<2x128xf32> to vector<2x32xf32>
    %257 = arith.negf %256 : vector<2x32xf32>
    %258 = math.exp %257 : vector<2x32xf32>
    %cst_40 = arith.constant 1.000000e+00 : f32
    %259 = vector.broadcast %cst_40 : f32 to vector<2x32xf32>
    %260 = arith.addf %259, %258 : vector<2x32xf32>
    %261 = arith.divf %259, %260 : vector<2x32xf32>
    %262 = vector.extract_strided_slice %252 {offsets = [0, 32], sizes = [2, 32], strides = [1, 1]} : vector<2x128xf32> to vector<2x32xf32>
    %263 = arith.negf %262 : vector<2x32xf32>
    %264 = math.exp %263 : vector<2x32xf32>
    %cst_41 = arith.constant 1.000000e+00 : f32
    %265 = vector.broadcast %cst_41 : f32 to vector<2x32xf32>
    %266 = arith.addf %265, %264 : vector<2x32xf32>
    %267 = arith.divf %265, %266 : vector<2x32xf32>
    %268 = vector.extract_strided_slice %252 {offsets = [0, 64], sizes = [2, 32], strides = [1, 1]} : vector<2x128xf32> to vector<2x32xf32>
    %269 = math.tanh %268 : vector<2x32xf32>
    %270 = vector.extract_strided_slice %252 {offsets = [0, 96], sizes = [2, 32], strides = [1, 1]} : vector<2x128xf32> to vector<2x32xf32>
    %271 = arith.negf %270 : vector<2x32xf32>
    %272 = math.exp %271 : vector<2x32xf32>
    %cst_42 = arith.constant 1.000000e+00 : f32
    %273 = vector.broadcast %cst_42 : f32 to vector<2x32xf32>
    %274 = arith.addf %273, %272 : vector<2x32xf32>
    %275 = arith.divf %273, %274 : vector<2x32xf32>
    %276 = arith.mulf %267, %219 : vector<2x32xf32>
    %277 = arith.mulf %261, %269 : vector<2x32xf32>
    %278 = arith.addf %276, %277 : vector<2x32xf32>
    %279 = math.tanh %278 : vector<2x32xf32>
    %280 = arith.mulf %275, %279 : vector<2x32xf32>
    %281 = vector.extract_strided_slice %255 {offsets = [0, 0], sizes = [2, 32], strides = [1, 1]} : vector<2x128xf32> to vector<2x32xf32>
    %282 = arith.negf %281 : vector<2x32xf32>
    %283 = math.exp %282 : vector<2x32xf32>
    %cst_43 = arith.constant 1.000000e+00 : f32
    %284 = vector.broadcast %cst_43 : f32 to vector<2x32xf32>
    %285 = arith.addf %284, %283 : vector<2x32xf32>
    %286 = arith.divf %284, %285 : vector<2x32xf32>
    %287 = vector.extract_strided_slice %255 {offsets = [0, 32], sizes = [2, 32], strides = [1, 1]} : vector<2x128xf32> to vector<2x32xf32>
    %288 = arith.negf %287 : vector<2x32xf32>
    %289 = math.exp %288 : vector<2x32xf32>
    %cst_44 = arith.constant 1.000000e+00 : f32
    %290 = vector.broadcast %cst_44 : f32 to vector<2x32xf32>
    %291 = arith.addf %290, %289 : vector<2x32xf32>
    %292 = arith.divf %290, %291 : vector<2x32xf32>
    %293 = vector.extract_strided_slice %255 {offsets = [0, 64], sizes = [2, 32], strides = [1, 1]} : vector<2x128xf32> to vector<2x32xf32>
    %294 = math.tanh %293 : vector<2x32xf32>
    %295 = vector.extract_strided_slice %255 {offsets = [0, 96], sizes = [2, 32], strides = [1, 1]} : vector<2x128xf32> to vector<2x32xf32>
    %296 = arith.negf %295 : vector<2x32xf32>
    %297 = math.exp %296 : vector<2x32xf32>
    %cst_45 = arith.constant 1.000000e+00 : f32
    %298 = vector.broadcast %cst_45 : f32 to vector<2x32xf32>
    %299 = arith.addf %298, %297 : vector<2x32xf32>
    %300 = arith.divf %298, %299 : vector<2x32xf32>
    %301 = arith.mulf %292, %244 : vector<2x32xf32>
    %302 = arith.mulf %286, %294 : vector<2x32xf32>
    %303 = arith.addf %301, %302 : vector<2x32xf32>
    %304 = math.tanh %303 : vector<2x32xf32>
    %305 = arith.mulf %300, %304 : vector<2x32xf32>
    %306 = tpu.concatenate %280, %305 in 1 : vector<2x32xf32>, vector<2x32xf32> -> vector<2x64xf32>
    %307 = arith.truncf %306 : vector<2x64xf32> to vector<2x64xbf16>
    %cst_46 = arith.constant dense<0.000000e+00> : vector<2x256xf32>
    %308 = tpu.matmul %307, %6, %cst_46 {dimension_numbers = #tpu.dot_dimension_numbers<[1], [0], [0], [1], [0, 0, 1, 1], [], []>} : vector<2x64xbf16>, vector<64x256xbf16>, vector<2x256xf32> -> vector<2x256xf32>
    %309 = vector.extract_strided_slice %5 {offsets = [10, 0], sizes = [2, 128], strides = [1, 1]} : vector<16x256xf32> to vector<2x128xf32>
    %310 = vector.extract_strided_slice %308 {offsets = [0, 0], sizes = [2, 128], strides = [1, 1]} : vector<2x256xf32> to vector<2x128xf32>
    %311 = arith.addf %309, %310 : vector<2x128xf32>
    %312 = vector.extract_strided_slice %5 {offsets = [4, 128], sizes = [2, 128], strides = [1, 1]} : vector<16x256xf32> to vector<2x128xf32>
    %313 = vector.extract_strided_slice %308 {offsets = [0, 128], sizes = [2, 128], strides = [1, 1]} : vector<2x256xf32> to vector<2x128xf32>
    %314 = arith.addf %312, %313 : vector<2x128xf32>
    %315 = vector.extract_strided_slice %311 {offsets = [0, 0], sizes = [2, 32], strides = [1, 1]} : vector<2x128xf32> to vector<2x32xf32>
    %316 = arith.negf %315 : vector<2x32xf32>
    %317 = math.exp %316 : vector<2x32xf32>
    %cst_47 = arith.constant 1.000000e+00 : f32
    %318 = vector.broadcast %cst_47 : f32 to vector<2x32xf32>
    %319 = arith.addf %318, %317 : vector<2x32xf32>
    %320 = arith.divf %318, %319 : vector<2x32xf32>
    %321 = vector.extract_strided_slice %311 {offsets = [0, 32], sizes = [2, 32], strides = [1, 1]} : vector<2x128xf32> to vector<2x32xf32>
    %322 = arith.negf %321 : vector<2x32xf32>
    %323 = math.exp %322 : vector<2x32xf32>
    %cst_48 = arith.constant 1.000000e+00 : f32
    %324 = vector.broadcast %cst_48 : f32 to vector<2x32xf32>
    %325 = arith.addf %324, %323 : vector<2x32xf32>
    %326 = arith.divf %324, %325 : vector<2x32xf32>
    %327 = vector.extract_strided_slice %311 {offsets = [0, 64], sizes = [2, 32], strides = [1, 1]} : vector<2x128xf32> to vector<2x32xf32>
    %328 = math.tanh %327 : vector<2x32xf32>
    %329 = vector.extract_strided_slice %311 {offsets = [0, 96], sizes = [2, 32], strides = [1, 1]} : vector<2x128xf32> to vector<2x32xf32>
    %330 = arith.negf %329 : vector<2x32xf32>
    %331 = math.exp %330 : vector<2x32xf32>
    %cst_49 = arith.constant 1.000000e+00 : f32
    %332 = vector.broadcast %cst_49 : f32 to vector<2x32xf32>
    %333 = arith.addf %332, %331 : vector<2x32xf32>
    %334 = arith.divf %332, %333 : vector<2x32xf32>
    %335 = arith.mulf %326, %278 : vector<2x32xf32>
    %336 = arith.mulf %320, %328 : vector<2x32xf32>
    %337 = arith.addf %335, %336 : vector<2x32xf32>
    %338 = math.tanh %337 : vector<2x32xf32>
    %339 = arith.mulf %334, %338 : vector<2x32xf32>
    %340 = vector.extract_strided_slice %314 {offsets = [0, 0], sizes = [2, 32], strides = [1, 1]} : vector<2x128xf32> to vector<2x32xf32>
    %341 = arith.negf %340 : vector<2x32xf32>
    %342 = math.exp %341 : vector<2x32xf32>
    %cst_50 = arith.constant 1.000000e+00 : f32
    %343 = vector.broadcast %cst_50 : f32 to vector<2x32xf32>
    %344 = arith.addf %343, %342 : vector<2x32xf32>
    %345 = arith.divf %343, %344 : vector<2x32xf32>
    %346 = vector.extract_strided_slice %314 {offsets = [0, 32], sizes = [2, 32], strides = [1, 1]} : vector<2x128xf32> to vector<2x32xf32>
    %347 = arith.negf %346 : vector<2x32xf32>
    %348 = math.exp %347 : vector<2x32xf32>
    %cst_51 = arith.constant 1.000000e+00 : f32
    %349 = vector.broadcast %cst_51 : f32 to vector<2x32xf32>
    %350 = arith.addf %349, %348 : vector<2x32xf32>
    %351 = arith.divf %349, %350 : vector<2x32xf32>
    %352 = vector.extract_strided_slice %314 {offsets = [0, 64], sizes = [2, 32], strides = [1, 1]} : vector<2x128xf32> to vector<2x32xf32>
    %353 = math.tanh %352 : vector<2x32xf32>
    %354 = vector.extract_strided_slice %314 {offsets = [0, 96], sizes = [2, 32], strides = [1, 1]} : vector<2x128xf32> to vector<2x32xf32>
    %355 = arith.negf %354 : vector<2x32xf32>
    %356 = math.exp %355 : vector<2x32xf32>
    %cst_52 = arith.constant 1.000000e+00 : f32
    %357 = vector.broadcast %cst_52 : f32 to vector<2x32xf32>
    %358 = arith.addf %357, %356 : vector<2x32xf32>
    %359 = arith.divf %357, %358 : vector<2x32xf32>
    %360 = arith.mulf %351, %303 : vector<2x32xf32>
    %361 = arith.mulf %345, %353 : vector<2x32xf32>
    %362 = arith.addf %360, %361 : vector<2x32xf32>
    %363 = math.tanh %362 : vector<2x32xf32>
    %364 = arith.mulf %359, %363 : vector<2x32xf32>
    %365 = tpu.concatenate %339, %364 in 1 : vector<2x32xf32>, vector<2x32xf32> -> vector<2x64xf32>
    %366 = arith.truncf %365 : vector<2x64xf32> to vector<2x64xbf16>
    %cst_53 = arith.constant dense<0.000000e+00> : vector<2x256xf32>
    %367 = tpu.matmul %366, %6, %cst_53 {dimension_numbers = #tpu.dot_dimension_numbers<[1], [0], [0], [1], [0, 0, 1, 1], [], []>} : vector<2x64xbf16>, vector<64x256xbf16>, vector<2x256xf32> -> vector<2x256xf32>
    %368 = vector.extract_strided_slice %5 {offsets = [12, 0], sizes = [2, 128], strides = [1, 1]} : vector<16x256xf32> to vector<2x128xf32>
    %369 = vector.extract_strided_slice %367 {offsets = [0, 0], sizes = [2, 128], strides = [1, 1]} : vector<2x256xf32> to vector<2x128xf32>
    %370 = arith.addf %368, %369 : vector<2x128xf32>
    %371 = vector.extract_strided_slice %5 {offsets = [2, 128], sizes = [2, 128], strides = [1, 1]} : vector<16x256xf32> to vector<2x128xf32>
    %372 = vector.extract_strided_slice %367 {offsets = [0, 128], sizes = [2, 128], strides = [1, 1]} : vector<2x256xf32> to vector<2x128xf32>
    %373 = arith.addf %371, %372 : vector<2x128xf32>
    %374 = vector.extract_strided_slice %370 {offsets = [0, 0], sizes = [2, 32], strides = [1, 1]} : vector<2x128xf32> to vector<2x32xf32>
    %375 = arith.negf %374 : vector<2x32xf32>
    %376 = math.exp %375 : vector<2x32xf32>
    %cst_54 = arith.constant 1.000000e+00 : f32
    %377 = vector.broadcast %cst_54 : f32 to vector<2x32xf32>
    %378 = arith.addf %377, %376 : vector<2x32xf32>
    %379 = arith.divf %377, %378 : vector<2x32xf32>
    %380 = vector.extract_strided_slice %370 {offsets = [0, 32], sizes = [2, 32], strides = [1, 1]} : vector<2x128xf32> to vector<2x32xf32>
    %381 = arith.negf %380 : vector<2x32xf32>
    %382 = math.exp %381 : vector<2x32xf32>
    %cst_55 = arith.constant 1.000000e+00 : f32
    %383 = vector.broadcast %cst_55 : f32 to vector<2x32xf32>
    %384 = arith.addf %383, %382 : vector<2x32xf32>
    %385 = arith.divf %383, %384 : vector<2x32xf32>
    %386 = vector.extract_strided_slice %370 {offsets = [0, 64], sizes = [2, 32], strides = [1, 1]} : vector<2x128xf32> to vector<2x32xf32>
    %387 = math.tanh %386 : vector<2x32xf32>
    %388 = vector.extract_strided_slice %370 {offsets = [0, 96], sizes = [2, 32], strides = [1, 1]} : vector<2x128xf32> to vector<2x32xf32>
    %389 = arith.negf %388 : vector<2x32xf32>
    %390 = math.exp %389 : vector<2x32xf32>
    %cst_56 = arith.constant 1.000000e+00 : f32
    %391 = vector.broadcast %cst_56 : f32 to vector<2x32xf32>
    %392 = arith.addf %391, %390 : vector<2x32xf32>
    %393 = arith.divf %391, %392 : vector<2x32xf32>
    %394 = arith.mulf %385, %337 : vector<2x32xf32>
    %395 = arith.mulf %379, %387 : vector<2x32xf32>
    %396 = arith.addf %394, %395 : vector<2x32xf32>
    %397 = math.tanh %396 : vector<2x32xf32>
    %398 = arith.mulf %393, %397 : vector<2x32xf32>
    %399 = vector.extract_strided_slice %373 {offsets = [0, 0], sizes = [2, 32], strides = [1, 1]} : vector<2x128xf32> to vector<2x32xf32>
    %400 = arith.negf %399 : vector<2x32xf32>
    %401 = math.exp %400 : vector<2x32xf32>
    %cst_57 = arith.constant 1.000000e+00 : f32
    %402 = vector.broadcast %cst_57 : f32 to vector<2x32xf32>
    %403 = arith.addf %402, %401 : vector<2x32xf32>
    %404 = arith.divf %402, %403 : vector<2x32xf32>
    %405 = vector.extract_strided_slice %373 {offsets = [0, 32], sizes = [2, 32], strides = [1, 1]} : vector<2x128xf32> to vector<2x32xf32>
    %406 = arith.negf %405 : vector<2x32xf32>
    %407 = math.exp %406 : vector<2x32xf32>
    %cst_58 = arith.constant 1.000000e+00 : f32
    %408 = vector.broadcast %cst_58 : f32 to vector<2x32xf32>
    %409 = arith.addf %408, %407 : vector<2x32xf32>
    %410 = arith.divf %408, %409 : vector<2x32xf32>
    %411 = vector.extract_strided_slice %373 {offsets = [0, 64], sizes = [2, 32], strides = [1, 1]} : vector<2x128xf32> to vector<2x32xf32>
    %412 = math.tanh %411 : vector<2x32xf32>
    %413 = vector.extract_strided_slice %373 {offsets = [0, 96], sizes = [2, 32], strides = [1, 1]} : vector<2x128xf32> to vector<2x32xf32>
    %414 = arith.negf %413 : vector<2x32xf32>
    %415 = math.exp %414 : vector<2x32xf32>
    %cst_59 = arith.constant 1.000000e+00 : f32
    %416 = vector.broadcast %cst_59 : f32 to vector<2x32xf32>
    %417 = arith.addf %416, %415 : vector<2x32xf32>
    %418 = arith.divf %416, %417 : vector<2x32xf32>
    %419 = arith.mulf %410, %362 : vector<2x32xf32>
    %420 = arith.mulf %404, %412 : vector<2x32xf32>
    %421 = arith.addf %419, %420 : vector<2x32xf32>
    %422 = math.tanh %421 : vector<2x32xf32>
    %423 = arith.mulf %418, %422 : vector<2x32xf32>
    %424 = tpu.concatenate %398, %423 in 1 : vector<2x32xf32>, vector<2x32xf32> -> vector<2x64xf32>
    %425 = arith.truncf %424 : vector<2x64xf32> to vector<2x64xbf16>
    %cst_60 = arith.constant dense<0.000000e+00> : vector<2x256xf32>
    %426 = tpu.matmul %425, %6, %cst_60 {dimension_numbers = #tpu.dot_dimension_numbers<[1], [0], [0], [1], [0, 0, 1, 1], [], []>} : vector<2x64xbf16>, vector<64x256xbf16>, vector<2x256xf32> -> vector<2x256xf32>
    %427 = vector.extract_strided_slice %5 {offsets = [14, 0], sizes = [2, 128], strides = [1, 1]} : vector<16x256xf32> to vector<2x128xf32>
    %428 = vector.extract_strided_slice %426 {offsets = [0, 0], sizes = [2, 128], strides = [1, 1]} : vector<2x256xf32> to vector<2x128xf32>
    %429 = arith.addf %427, %428 : vector<2x128xf32>
    %430 = vector.extract_strided_slice %5 {offsets = [0, 128], sizes = [2, 128], strides = [1, 1]} : vector<16x256xf32> to vector<2x128xf32>
    %431 = vector.extract_strided_slice %426 {offsets = [0, 128], sizes = [2, 128], strides = [1, 1]} : vector<2x256xf32> to vector<2x128xf32>
    %432 = arith.addf %430, %431 : vector<2x128xf32>
    %433 = vector.extract_strided_slice %429 {offsets = [0, 0], sizes = [2, 32], strides = [1, 1]} : vector<2x128xf32> to vector<2x32xf32>
    %434 = arith.negf %433 : vector<2x32xf32>
    %435 = math.exp %434 : vector<2x32xf32>
    %cst_61 = arith.constant 1.000000e+00 : f32
    %436 = vector.broadcast %cst_61 : f32 to vector<2x32xf32>
    %437 = arith.addf %436, %435 : vector<2x32xf32>
    %438 = arith.divf %436, %437 : vector<2x32xf32>
    %439 = vector.extract_strided_slice %429 {offsets = [0, 32], sizes = [2, 32], strides = [1, 1]} : vector<2x128xf32> to vector<2x32xf32>
    %440 = arith.negf %439 : vector<2x32xf32>
    %441 = math.exp %440 : vector<2x32xf32>
    %cst_62 = arith.constant 1.000000e+00 : f32
    %442 = vector.broadcast %cst_62 : f32 to vector<2x32xf32>
    %443 = arith.addf %442, %441 : vector<2x32xf32>
    %444 = arith.divf %442, %443 : vector<2x32xf32>
    %445 = vector.extract_strided_slice %429 {offsets = [0, 64], sizes = [2, 32], strides = [1, 1]} : vector<2x128xf32> to vector<2x32xf32>
    %446 = math.tanh %445 : vector<2x32xf32>
    %447 = vector.extract_strided_slice %429 {offsets = [0, 96], sizes = [2, 32], strides = [1, 1]} : vector<2x128xf32> to vector<2x32xf32>
    %448 = arith.negf %447 : vector<2x32xf32>
    %449 = math.exp %448 : vector<2x32xf32>
    %cst_63 = arith.constant 1.000000e+00 : f32
    %450 = vector.broadcast %cst_63 : f32 to vector<2x32xf32>
    %451 = arith.addf %450, %449 : vector<2x32xf32>
    %452 = arith.divf %450, %451 : vector<2x32xf32>
    %453 = arith.mulf %444, %396 : vector<2x32xf32>
    %454 = arith.mulf %438, %446 : vector<2x32xf32>
    %455 = arith.addf %453, %454 : vector<2x32xf32>
    %456 = math.tanh %455 : vector<2x32xf32>
    %457 = arith.mulf %452, %456 : vector<2x32xf32>
    %458 = vector.extract_strided_slice %432 {offsets = [0, 0], sizes = [2, 32], strides = [1, 1]} : vector<2x128xf32> to vector<2x32xf32>
    %459 = arith.negf %458 : vector<2x32xf32>
    %460 = math.exp %459 : vector<2x32xf32>
    %cst_64 = arith.constant 1.000000e+00 : f32
    %461 = vector.broadcast %cst_64 : f32 to vector<2x32xf32>
    %462 = arith.addf %461, %460 : vector<2x32xf32>
    %463 = arith.divf %461, %462 : vector<2x32xf32>
    %464 = vector.extract_strided_slice %432 {offsets = [0, 32], sizes = [2, 32], strides = [1, 1]} : vector<2x128xf32> to vector<2x32xf32>
    %465 = arith.negf %464 : vector<2x32xf32>
    %466 = math.exp %465 : vector<2x32xf32>
    %cst_65 = arith.constant 1.000000e+00 : f32
    %467 = vector.broadcast %cst_65 : f32 to vector<2x32xf32>
    %468 = arith.addf %467, %466 : vector<2x32xf32>
    %469 = arith.divf %467, %468 : vector<2x32xf32>
    %470 = vector.extract_strided_slice %432 {offsets = [0, 64], sizes = [2, 32], strides = [1, 1]} : vector<2x128xf32> to vector<2x32xf32>
    %471 = math.tanh %470 : vector<2x32xf32>
    %472 = vector.extract_strided_slice %432 {offsets = [0, 96], sizes = [2, 32], strides = [1, 1]} : vector<2x128xf32> to vector<2x32xf32>
    %473 = arith.negf %472 : vector<2x32xf32>
    %474 = math.exp %473 : vector<2x32xf32>
    %cst_66 = arith.constant 1.000000e+00 : f32
    %475 = vector.broadcast %cst_66 : f32 to vector<2x32xf32>
    %476 = arith.addf %475, %474 : vector<2x32xf32>
    %477 = arith.divf %475, %476 : vector<2x32xf32>
    %478 = arith.mulf %469, %421 : vector<2x32xf32>
    %479 = arith.mulf %463, %471 : vector<2x32xf32>
    %480 = arith.addf %478, %479 : vector<2x32xf32>
    %481 = math.tanh %480 : vector<2x32xf32>
    %482 = arith.mulf %477, %481 : vector<2x32xf32>
    %483 = tpu.concatenate %44, %482, %103, %423, %162, %364, %221, %305, %280, %246, %339, %187, %398, %128, %457, %69 in 1 : vector<2x32xf32>, vector<2x32xf32>, vector<2x32xf32>, vector<2x32xf32>, vector<2x32xf32>, vector<2x32xf32>, vector<2x32xf32>, vector<2x32xf32>, vector<2x32xf32>, vector<2x32xf32>, vector<2x32xf32>, vector<2x32xf32>, vector<2x32xf32>, vector<2x32xf32>, vector<2x32xf32>, vector<2x32xf32> -> vector<2x512xf32>
    %484 = arith.truncf %483 : vector<2x512xf32> to vector<2x512xbf16>
    %c0_67 = arith.constant 0 : index
    %c0_68 = arith.constant 0 : index
    %485 = vector.load %arg4[%c0_67, %c0_68] : memref<512x32xbf16, #tpu.memory_space<vmem>>, vector<512x32xbf16>
    %cst_69 = arith.constant dense<0.000000e+00> : vector<2x32xf32>
    %486 = tpu.matmul %484, %485, %cst_69 {dimension_numbers = #tpu.dot_dimension_numbers<[1], [0], [0], [1], [0, 0, 1, 1], [], []>} : vector<2x512xbf16>, vector<512x32xbf16>, vector<2x32xf32> -> vector<2x32xf32>
    %c0_70 = arith.constant 0 : index
    %c0_71 = arith.constant 0 : index
    %487 = vector.load %arg5[%c0_70, %c0_71] : memref<1x32xf32, #tpu.memory_space<vmem>>, vector<1x32xf32>
    %488 = vector.broadcast %487 : vector<1x32xf32> to vector<2x32xf32>
    %489 = arith.addf %486, %488 : vector<2x32xf32>
    %cst_72 = arith.constant 0.000000e+00 : f32
    %490 = vector.broadcast %cst_72 : f32 to vector<2x32xf32>
    %491 = arith.maximumf %489, %490 : vector<2x32xf32>
    %c0_73 = arith.constant 0 : index
    %c0_74 = arith.constant 0 : index
    %492 = vector.load %arg6[%c0_73, %c0_74] : memref<1x32xf32, #tpu.memory_space<vmem>>, vector<1x32xf32>
    %493 = vector.broadcast %492 : vector<1x32xf32> to vector<2x32xf32>
    %494 = arith.mulf %491, %493 : vector<2x32xf32>
    %cst_75 = arith.constant dense<0.000000e+00> : vector<2xf32>
    %495 = vector.multi_reduction <add>, %494, %cst_75 [1] : vector<2x32xf32> to vector<2xf32>
    %496 = vector.shape_cast %495 : vector<2xf32> to vector<2x1xf32>
    %c0_76 = arith.constant 0 : index
    %c0_77 = arith.constant 0 : index
    %497 = vector.load %arg7[%c0_76, %c0_77] : memref<1x1xf32, #tpu.memory_space<vmem>>, vector<1x1xf32>
    %498 = vector.broadcast %497 : vector<1x1xf32> to vector<2x1xf32>
    %499 = arith.addf %496, %498 : vector<2x1xf32>
    %500 = arith.negf %499 : vector<2x1xf32>
    %501 = math.exp %500 : vector<2x1xf32>
    %cst_78 = arith.constant 1.000000e+00 : f32
    %502 = vector.broadcast %cst_78 : f32 to vector<2x1xf32>
    %503 = arith.addf %502, %501 : vector<2x1xf32>
    %504 = arith.divf %502, %503 : vector<2x1xf32>
    %c0_79 = arith.constant 0 : index
    %c0_80 = arith.constant 0 : index
    %505 = vector.load %arg8[%c0_79, %c0_80] : memref<2x1xf32, #tpu.memory_space<vmem>>, vector<2x1xf32>
    tpu.vector_store %arg8[%c0_79, %c0_80], %504 {strides = array<i32>} : memref<2x1xf32, #tpu.memory_space<vmem>>, vector<2x1xf32>,
    return
  }
}

</mosaic_0001>

<bundles_post_ra>
// kernel: sentiment_forward.1
= control target key start
LH: loop header
LB: loop body
LE: loop exit
PB: predicated region body
PF: predicated region fallthrough
CT: control target
= control target key end

     0   :  { %v1842_v1 = vmov 0   ;;  %vm63_vm0 = vcmask 130048   ;;  %v1843_v12 = vmov 0.0|0.0   ;;  %v38_v13 = vlaneseq  ;;  %s1845_s26 = smov 32   ;;  %s2351_s2 = inlined_call_operand.vmem [shape: bf16[64,256], index: 2, kind: input, shape index: {}]   ;;  %s2352_s1 = inlined_call_operand.vmem [shape: bf16[16,256], index: 1, kind: input, shape index: {}]   ;;  %s2353_s0 = inlined_call_operand.vmem [shape: bf16[16,16], index: 0, kind: input, shape index: {}]   ;;  %s2354_s3 = inlined_call_operand.vmem [shape: f32[1,256], index: 3, kind: input, shape index: {}]   ;;  %s2355_s4 = inlined_call_operand.vmem [shape: bf16[512,32], index: 4, kind: input, shape index: {}]   ;;  %s2356_s7 = inlined_call_operand.<no memory space> [shape: f32[1,1], index: 7, kind: input, shape index: {}]   ;;  %s2357_s5 = inlined_call_operand.vmem [shape: f32[1,32], index: 5, kind: input, shape index: {}]   ;;  %s2358_s6 = inlined_call_operand.vmem [shape: f32[1,32], index: 6, kind: input, shape index: {}]   ;;  %s2359_s8 = inlined_call_operand.vmem [shape: f32[2,1], index: 8, kind: output, shape index: {}]  }
   0x1   :  { %v1895_v0 = vld [vmem:[%s2351_s2 + $0x4] ss:$8 sps:$4 sm:$0xff]   ;;  %99 = vmatprep.mubr.bf16.mxu0 %v1842_v1  ;;  %195 = vmatprep.mubr.bf16.mxu1 %v1842_v1  ;;  %v1902_v2 = vld [vmem:[%s2351_s2] ss:$8 sps:$4 sm:$0xff]   ;;  %v1908_v3 = vld [vmem:[%s2351_s2 + $0x14] ss:$8 sps:$4 sm:$0xff]  }
   0x2   :  { %163 = vmatprep.subr.bf16.mxu1 %v1895_v0  ;;  %v1913_v4 = vld [vmem:[%s2351_s2 + $0x10] ss:$8 sps:$4 sm:$0xff]   ;;  %v1668_v5 = vld [vmem:[%s2352_s1 + $0x4] ss:$8 sps:$4 sm:$0xff]   ;;  %v1670_v6 = vld [vmem:[%s2352_s1] ss:$8 sps:$4 sm:$0xff]  }
   0x3   :  { %164 = vmatpush1.bf16.msra.mxu1 %v1902_v2  ;;  %v1926_v7 = vld [vmem:[%s2351_s2 + $0x24] ss:$8 sps:$4 sm:$0xff]   ;;  %67 = vmatprep.subr.bf16.mxu0 %v1668_v5  ;;  %v1935_v9 = vld [vmem:[%s2351_s2 + $0x20] ss:$8 sps:$4 sm:$0xff]   ;;  %v1942_v10 = vld [vmem:[%s2351_s2 + $0x34] ss:$8 sps:$4 sm:$0xff]  }
   0x4   :  { %165 = vmatprep.subr.bf16.mxu1 %v1908_v3  ;;  %68 = vmatpush1.bf16.msra.mxu0 %v1670_v6  ;;  %v1674_v8 = vld [vmem:[%s2353_s0] sm:$0xff]   ;;  %v1950_v11 = vld [vmem:[%s2351_s2 + $0x30] ss:$8 sps:$4 sm:$0xff]   ;;  %v39_v14 = vshrl.u32 %v38_v13, 7  ;;  %vm266_vm1 = vcmask 261120   ;;  %vm159_vm2 = vcmask 523264  }
   0x5   :  { %272 = vmatprep.subr.bf16.mxu0 %v1895_v0  ;;  %v36_v16 = vld [vmem:[%s2354_s3] sm:$0x3]  ;;  %s1844_s3 = smov 64   ;;  %vm1126_vm3 = vcmask 785408   ;;  %vm1493_vm4 = vcmask 254976   ;;  %vm1511_vm5 = vcmask 1024  }
   0x6   :  { %v44_v15 = vsub.s32 1, %v39_v14  ;;  %v40_v17 = vsub.s32 0, %v39_v14 }
   0x7   :  { %166 = vmatpush1.bf16.msra.mxu1 %v1913_v4  ;;  %1520 = vmatmul.mubr.msk.bf16.vlgmr.msra.gmra.mrb[0].mxu0 %vm63_vm0, %v1674_v8 }
   0x8   :  { %167 = vmatprep.subr.bf16.mxu1 %v1926_v7  ;;  %273 = vmatpush1.bf16.msra.mxu0 %v1902_v2  ;;  %v45_v18 = vrot.slane %v36_v16, %v44_v15  ;;  %v41_v19 = vrot.slane %v36_v16, %v40_v17 }
   0x9   :  { %304 = vmatprep.mubr.bf16.mxu0 %v1842_v1  ;;  %274 = vmatprep.subr.bf16.mxu0 %v1908_v3 }
   0xb   :  { %168 = vmatpush1.bf16.msra.mxu1 %v1935_v9 }
   0xc   :  { %169 = vmatprep.subr.bf16.mxu1 %v1942_v10  ;;  %275 = vmatpush1.bf16.msra.mxu0 %v1913_v4 }
   0xd   :  { %276 = vmatprep.subr.bf16.mxu0 %v1926_v7 }
   0xf   :  { %170 = vmatpush1.bf16.msra.mxu1 %v1950_v11 }
  0x10   :  { %391 = vmatprep.subr.bf16.mxu1 %v1895_v0  ;;  %277 = vmatpush1.bf16.msra.mxu0 %v1935_v9 }
  0x11   :  { %278 = vmatprep.subr.bf16.mxu0 %v1942_v10 }
  0x12   :  { %196 = vmatmul.mubr.bf16.vlgmr.msra.gmra.mrb[0].mxu1 %v1843_v12 }
  0x13   :  { %392 = vmatpush1.bf16.msra.mxu1 %v1902_v2  ;;  %423 = vmatprep.mubr.bf16.mxu1 %v1842_v1 }
  0x14   :  { %393 = vmatprep.subr.bf16.mxu1 %v1908_v3  ;;  %279 = vmatpush1.bf16.msra.mxu0 %v1950_v11 }
  0x15   :  { %510 = vmatprep.subr.bf16.mxu0 %v1895_v0 }
  0x17   :  { %394 = vmatpush1.bf16.msra.mxu1 %v1913_v4 }
  0x18   :  { %395 = vmatprep.subr.bf16.mxu1 %v1926_v7 }
  0x1b   :  { %396 = vmatpush1.bf16.msra.mxu1 %v1935_v9 }
  0x1c   :  { %397 = vmatprep.subr.bf16.mxu1 %v1942_v10 }
  0x1f   :  { %398 = vmatpush1.bf16.msra.mxu1 %v1950_v11 }
  0x20   :  { %626 = vmatprep.subr.bf16.mxu1 %v1895_v0 }
  0xda   :  { %v101_v20 = vpop.f32.mrb[0].mxu0 }
  0xdb   :  { %v103_v21 = vpop.f32.mrb[1].mxu0  ;;  %v1978_v28 = vadd.f32 %v101_v20, %v41_v19 }
  0xdc   :  { %v1974_v22 = vadd.f32 %v103_v21, %v45_v18  ;;  %v105_v23 = vpop.f32.mrb[2].mxu0 }
  0xdd   :  { %v1976_v24 = vadd.f32 %v105_v23, %v41_v19  ;;  %v107_v25 = vpop.f32.mrb[3].mxu0 }
  0xde   :  { %v1980_v29 = vadd.f32 %v107_v25, %v45_v18 }
  0xe5   :  { %v197_v26 = vpop.f32.mrb[0].mxu1 }
  0xe6   :  { %v199_v27 = vpop.f32.mrb[1].mxu1  ;;  %v204_v34 = vadd.f32 %v197_v26, %v1978_v28 }
  0xe7   :  { %v206_v30 = vrot.slane %v199_v27, 2  ;;  %v201_v31 = vpop.f32.mrb[2].mxu1 }
  0xe8   :  { %v202_v32 = vpop.f32.mrb[3].mxu1  ;;  %v1529_v38 = vmul.f32 -1.442695, %v204_v34 }
  0xe9   :  { %v208_v33 = vadd.f32 %v206_v30, %v1980_v29 }
  0xeb   :  { %1710 = vtanh.f32 %v208_v33  ;;  %v1530_v37 = vmul.f32 -1.442695, %v208_v33 }
  0xec   :  { %1712 = vtanh.f32 %v204_v34 }
  0xed   :  { %1714 = vpow2.f32 %v1530_v37 }
  0xee   :  { %1716 = vpow2.f32 %v1529_v38 }
  0xf5   :  { %v1711_v35 = vpop.eup %1710 }
  0xf6   :  { %242 = vrot.lane.b32.xlu0 %v1711_v35, %s1844_s3  ;;  %v1713_v36 = vpop.eup %1712 }
  0xf7   :  { %v1715_v39 = vpop.eup %1714 }
  0xf8   :  { %v236_v40 = vadd.f32 1.0, %v1715_v39  ;;  %v1717_v41 = vpop.eup %1716 }
  0xf9   :  { %v212_v42 = vadd.f32 1.0, %v1717_v41 }
  0xfa   :  { %218 = vrot.lane.b32.xlu0 %v1713_v36, %s1844_s3  ;;  %1718 = vrcp.f32 %v236_v40 }
  0xfb   :  { %1720 = vrcp.f32 %v212_v42 }
 0x104   :  { %v1719_v43 = vpop.eup %1718 }
 0x105   :  { %v1721_v46 = vpop.eup %1720  ;;  %v240_v49 = vmul.f32 0.0, %v1719_v43 }
 0x106   :  { %v216_v52 = vmul.f32 0.0, %v1721_v46 }
 0x168   :  { %v243_v44 = vpop.permute.xlu0 %242 }
 0x169   :  { %v245_v45 = vmul.f32 %v1719_v43, %v243_v44 }
 0x16b   :  { %247 = vrot.lane.b32.xlu1 %v245_v45, %s1845_s26 }
 0x16c   :  { %v219_v47 = vpop.permute.xlu0 %218 }
 0x16d   :  { %v221_v48 = vmul.f32 %v1721_v46, %v219_v47 }
 0x16f   :  { %223 = vrot.lane.b32.xlu1 %v221_v48, %s1845_s26 }
 0x1dd   :  { %v248_v50 = vpop.permute.xlu1 %247 }
 0x1de   :  { %v1988_v51 = vadd.f32 %v248_v50, %v240_v49 }
 0x1e0   :  { %1722 = vtanh.f32 %v1988_v51  ;;  %v356_v38 = vrot.slane %v1988_v51, 2 }
 0x1e1   :  { %v224_v53 = vpop.permute.xlu1 %223 }
 0x1e2   :  { %v1991_v54 = vadd.f32 %v224_v53, %v216_v52 }
 0x1e4   :  { %1724 = vtanh.f32 %v1991_v54  ;;  %v329_v37 = vrot.slane %v1991_v54, 6 }
 0x1ea   :  { %v1723_v55 = vpop.eup %1722 }
 0x1eb   :  { %253 = vrot.lane.b32.xlu0 %v1723_v55, %s1844_s3 }
 0x1ee   :  { %v1725_v56 = vpop.eup %1724 }
 0x1ef   :  { %229 = vrot.lane.b32.xlu1 %v1725_v56, %s1844_s3 }
 0x25d   :  { %v254_v57 = vpop.permute.xlu0 %253 }
 0x25e   :  { %v1996_v58 = vmul.f32 %v1719_v43, %v254_v57 }
 0x260   :  { %v262_v59 = vrot.slane %v1996_v58, 6  ;;  %v1552_v58 = vld [vmem:[%s2357_s5] ss:$0 sm:$0xff] }
 0x261   :  { %v230_v60 = vpop.permute.xlu1 %229 }
 0x262   :  { %v232_v61 = vmul.f32 %v1721_v46, %v230_v60  ;;  %263 = vrot.lane.b32.xlu1 %v262_v59, %s1844_s3 }
 0x264   :  { %258 = vrot.lane.b32.xlu0 %v232_v61, %s1845_s26 }
 0x2d4   :  { %v264_v62 = vpop.permute.xlu1 %263 }
 0x2d6   :  { %v2003_v63 = vpop.permute.xlu0 %258 }
 0x2d7   :  { %v267_v5 = vsel %vm266_vm1, %v2003_v63, %v264_v62 }
 0x2d8   :  { %v268_v6 = vpack.c.bf16 %v267_v5, %v267_v5 }
 0x2da   :  { %1531 = vmatmul.mubr.msk.bf16.vlgmr.msra.gmra.mrb[4].mxu0 %vm159_vm2, %v268_v6 }
 0x2db   :  { %511 = vmatpush1.bf16.msra.mxu0 %v1902_v2  ;;  %542 = vmatprep.mubr.bf16.mxu0 %v1842_v1 }
 0x2dc   :  { %512 = vmatprep.subr.bf16.mxu0 %v1908_v3 }
 0x2df   :  { %513 = vmatpush1.bf16.msra.mxu0 %v1913_v4 }
 0x2e0   :  { %514 = vmatprep.subr.bf16.mxu0 %v1926_v7 }
 0x2e3   :  { %515 = vmatpush1.bf16.msra.mxu0 %v1935_v9 }
 0x2e4   :  { %516 = vmatprep.subr.bf16.mxu0 %v1942_v10 }
 0x2e7   :  { %517 = vmatpush1.bf16.msra.mxu0 %v1950_v11 }
 0x2e8   :  { %740 = vmatprep.subr.bf16.mxu0 %v1895_v0 }
 0x3ad   :  { %v306_v8 = vpop.f32.mrb[4].mxu0 }
 0x3ae   :  { %v314_v12 = vrot.slane %v306_v8, 6  ;;  %v308_v13 = vpop.f32.mrb[5].mxu0 }
 0x3af   :  { %v318_v14 = vrot.slane %v308_v13, 4  ;;  %v310_v15 = vpop.f32.mrb[6].mxu0 }
 0x3b0   :  { %v316_v16 = vadd.f32 %v314_v12, %v1978_v28  ;;  %v311_v17 = vpop.f32.mrb[7].mxu0 }
 0x3b1   :  { %v320_v18 = vadd.f32 %v318_v14, %v1980_v29 }
 0x3b2   :  { %1726 = vtanh.f32 %v316_v16  ;;  %v1532_v21 = vmul.f32 -1.442695, %v316_v16 }
 0x3b3   :  { %1728 = vtanh.f32 %v320_v18  ;;  %v1533_v23 = vmul.f32 -1.442695, %v320_v18 }
 0x3b4   :  { %1730 = vpow2.f32 %v1532_v21 }
 0x3b5   :  { %1732 = vpow2.f32 %v1533_v23 }
 0x3bc   :  { %v1727_v19 = vpop.eup %1726 }
 0x3bd   :  { %v1729_v20 = vpop.eup %1728  ;;  %333 = vrot.lane.b32.xlu1 %v1727_v19, %s1844_s3 }
 0x3be   :  { %360 = vrot.lane.b32.xlu0 %v1729_v20, %s1844_s3  ;;  %v1731_v25 = vpop.eup %1730 }
 0x3bf   :  { %v1733_v26 = vpop.eup %1732  ;;  %v324_v27 = vadd.f32 1.0, %v1731_v25 }
 0x3c0   :  { %v351_v30 = vadd.f32 1.0, %v1733_v26 }
 0x3c1   :  { %1734 = vrcp.f32 %v324_v27 }
 0x3c2   :  { %1736 = vrcp.f32 %v351_v30 }
 0x3cb   :  { %v1735_v31 = vpop.eup %1734 }
 0x3cc   :  { %v1737_v33 = vpop.eup %1736  ;;  %v331_v39 = vmul.f32 %v1735_v31, %v329_v37 }
 0x3cd   :  { %v358_v41 = vmul.f32 %v1737_v33, %v356_v38 }
 0x42f   :  { %v334_v32 = vpop.permute.xlu1 %333 }
 0x430   :  { %v336_v34 = vmul.f32 %v1735_v31, %v334_v32  ;;  %v361_v35 = vpop.permute.xlu0 %360 }
 0x431   :  { %v363_v36 = vmul.f32 %v1737_v33, %v361_v35 }
 0x432   :  { %338 = vrot.lane.b32.xlu1 %v336_v34, %s1845_s26 }
 0x433   :  { %365 = vrot.lane.b32.xlu0 %v363_v36, %s1845_s26 }
 0x4a4   :  { %v339_v40 = vpop.permute.xlu1 %338 }
 0x4a5   :  { %v2025_v42 = vadd.f32 %v339_v40, %v331_v39  ;;  %v366_v43 = vpop.permute.xlu0 %365 }
 0x4a6   :  { %v2027_v44 = vadd.f32 %v366_v43, %v358_v41 }
 0x4a7   :  { %1738 = vtanh.f32 %v2025_v42 }
 0x4a8   :  { %1740 = vtanh.f32 %v2027_v44  ;;  %v475_v32 = vrot.slane %v2027_v44, 2 }
 0x4b1   :  { %v1739_v45 = vpop.eup %1738 }
 0x4b2   :  { %v1741_v46 = vpop.eup %1740  ;;  %344 = vrot.lane.b32.xlu1 %v1739_v45, %s1844_s3 }
 0x4b3   :  { %371 = vrot.lane.b32.xlu0 %v1741_v46, %s1844_s3 }
 0x524   :  { %v345_v47 = vpop.permute.xlu1 %344 }
 0x525   :  { %v2033_v48 = vmul.f32 %v1735_v31, %v345_v47  ;;  %v372_v49 = vpop.permute.xlu0 %371  ;;  %v448_v31 = vrot.slane %v2025_v42, 6 }
 0x526   :  { %v2035_v50 = vmul.f32 %v1737_v33, %v372_v49 }
 0x527   :  { %376 = vrot.lane.b32.xlu0 %v2033_v48, %s1845_s26 }
 0x528   :  { %v380_v51 = vrot.slane %v2035_v50, 2 }
 0x52a   :  { %381 = vrot.lane.b32.xlu1 %v380_v51, %s1844_s3 }
 0x599   :  { %v377_v52 = vpop.permute.xlu0 %376 }
 0x59c   :  { %v382_v53 = vpop.permute.xlu1 %381 }
 0x59d   :  { %v384_v54 = vsel %vm266_vm1, %v377_v52, %v382_v53 }
 0x59e   :  { %v385_v55 = vpack.c.bf16 %v384_v54, %v384_v54 }
 0x5a0   :  { %v387_v56 = vrot.slane %v385_v55, 1 }
 0x5a2   :  { %1534 = vmatmul.mubr.msk.bf16.vlgmr.msra.gmra.mrb[4].mxu1 %vm159_vm2, %v387_v56 }
 0x5a3   :  { %627 = vmatpush1.bf16.msra.mxu1 %v1902_v2  ;;  %658 = vmatprep.mubr.bf16.mxu1 %v1842_v1 }
 0x5a4   :  { %628 = vmatprep.subr.bf16.mxu1 %v1908_v3 }
 0x5a7   :  { %629 = vmatpush1.bf16.msra.mxu1 %v1913_v4 }
 0x5a8   :  { %630 = vmatprep.subr.bf16.mxu1 %v1926_v7 }
 0x5ab   :  { %631 = vmatpush1.bf16.msra.mxu1 %v1935_v9 }
 0x5ac   :  { %632 = vmatprep.subr.bf16.mxu1 %v1942_v10 }
 0x5af   :  { %633 = vmatpush1.bf16.msra.mxu1 %v1950_v11 }
 0x5b0   :  { %859 = vmatprep.subr.bf16.mxu1 %v1895_v0 }
 0x675   :  { %v425_v57 = vpop.f32.mrb[4].mxu1 }
 0x676   :  { %v433_v60 = vrot.slane %v425_v57, 4  ;;  %v427_v61 = vpop.f32.mrb[5].mxu1 }
 0x677   :  { %v437_v62 = vrot.slane %v427_v61, 6  ;;  %v429_v5 = vpop.f32.mrb[6].mxu1 }
 0x678   :  { %v435_v6 = vadd.f32 %v433_v60, %v1978_v28  ;;  %v430_v8 = vpop.f32.mrb[7].mxu1 }
 0x679   :  { %v439_v12 = vadd.f32 %v437_v62, %v1980_v29 }
 0x67a   :  { %1742 = vtanh.f32 %v435_v6  ;;  %v1535_v15 = vmul.f32 -1.442695, %v435_v6 }
 0x67b   :  { %1744 = vtanh.f32 %v439_v12  ;;  %v1536_v16 = vmul.f32 -1.442695, %v439_v12 }
 0x67c   :  { %1746 = vpow2.f32 %v1535_v15 }
 0x67d   :  { %1748 = vpow2.f32 %v1536_v16 }
 0x684   :  { %v1743_v13 = vpop.eup %1742 }
 0x685   :  { %v1745_v14 = vpop.eup %1744  ;;  %452 = vrot.lane.b32.xlu1 %v1743_v13, %s1844_s3 }
 0x686   :  { %479 = vrot.lane.b32.xlu0 %v1745_v14, %s1844_s3  ;;  %v1747_v17 = vpop.eup %1746 }
 0x687   :  { %v1749_v18 = vpop.eup %1748  ;;  %v443_v19 = vadd.f32 1.0, %v1747_v17 }
 0x688   :  { %v470_v20 = vadd.f32 1.0, %v1749_v18 }
 0x689   :  { %1750 = vrcp.f32 %v443_v19 }
 0x68a   :  { %1752 = vrcp.f32 %v470_v20 }
 0x693   :  { %v1751_v21 = vpop.eup %1750 }
 0x694   :  { %v1753_v25 = vpop.eup %1752  ;;  %v450_v33 = vmul.f32 %v1751_v21, %v448_v31 }
 0x695   :  { %v477_v35 = vmul.f32 %v1753_v25, %v475_v32 }
 0x6f7   :  { %v453_v23 = vpop.permute.xlu1 %452 }
 0x6f8   :  { %v455_v26 = vmul.f32 %v1751_v21, %v453_v23  ;;  %v480_v27 = vpop.permute.xlu0 %479 }
 0x6f9   :  { %v482_v30 = vmul.f32 %v1753_v25, %v480_v27 }
 0x6fa   :  { %457 = vrot.lane.b32.xlu1 %v455_v26, %s1845_s26 }
 0x6fb   :  { %484 = vrot.lane.b32.xlu0 %v482_v30, %s1845_s26 }
 0x76c   :  { %v458_v34 = vpop.permute.xlu1 %457 }
 0x76d   :  { %v2060_v36 = vadd.f32 %v458_v34, %v450_v33  ;;  %v485_v37 = vpop.permute.xlu0 %484  ;;  %v1114_v34 = vrot.slane %v2035_v50, 4 }
 0x76e   :  { %v2062_v38 = vadd.f32 %v485_v37, %v477_v35 }
 0x76f   :  { %1754 = vtanh.f32 %v2060_v36  ;;  %v564_v20 = vrot.slane %v2060_v36, 6 }
 0x770   :  { %1756 = vtanh.f32 %v2062_v38  ;;  %v591_v19 = vrot.slane %v2062_v38, 2 }
 0x779   :  { %v1755_v39 = vpop.eup %1754 }
 0x77a   :  { %v1757_v40 = vpop.eup %1756  ;;  %463 = vrot.lane.b32.xlu1 %v1755_v39, %s1844_s3 }
 0x77b   :  { %490 = vrot.lane.b32.xlu0 %v1757_v40, %s1844_s3  ;;  %v1082_v40 = vrot.slane %v2033_v48, 2 }
 0x7ec   :  { %v464_v41 = vpop.permute.xlu1 %463 }
 0x7ed   :  { %v2068_v42 = vmul.f32 %v1751_v21, %v464_v41  ;;  %v491_v43 = vpop.permute.xlu0 %490 }
 0x7ee   :  { %v2070_v44 = vmul.f32 %v1753_v25, %v491_v43 }
 0x7ef   :  { %495 = vrot.lane.b32.xlu0 %v2068_v42, %s1845_s26 }
 0x7f0   :  { %v499_v45 = vrot.slane %v2070_v44, 6 }
 0x7f2   :  { %500 = vrot.lane.b32.xlu1 %v499_v45, %s1844_s3 }
 0x861   :  { %v496_v46 = vpop.permute.xlu0 %495 }
 0x864   :  { %v501_v47 = vpop.permute.xlu1 %500 }
 0x865   :  { %v503_v49 = vsel %vm266_vm1, %v496_v46, %v501_v47 }
 0x866   :  { %v504_v51 = vpack.c.bf16 %v503_v49, %v503_v49 }
 0x868   :  { %v506_v52 = vrot.slane %v504_v51, 2 }
 0x86a   :  { %1537 = vmatmul.mubr.msk.bf16.vlgmr.msra.gmra.mrb[8].mxu0 %vm159_vm2, %v506_v52 }
 0x86b   :  { %741 = vmatpush1.bf16.msra.mxu0 %v1902_v2  ;;  %772 = vmatprep.mubr.bf16.mxu0 %v1842_v1 }
 0x86c   :  { %742 = vmatprep.subr.bf16.mxu0 %v1908_v3 }
 0x86f   :  { %743 = vmatpush1.bf16.msra.mxu0 %v1913_v4 }
 0x870   :  { %744 = vmatprep.subr.bf16.mxu0 %v1926_v7 }
 0x873   :  { %745 = vmatpush1.bf16.msra.mxu0 %v1935_v9 }
 0x874   :  { %746 = vmatprep.subr.bf16.mxu0 %v1942_v10 }
 0x877   :  { %747 = vmatpush1.bf16.msra.mxu0 %v1950_v11 }
 0x878   :  { %978 = vmatprep.subr.bf16.mxu0 %v1895_v0 }
 0x93d   :  { %v544_v53 = vpop.f32.mrb[8].mxu0 }
 0x93e   :  { %v552_v54 = vrot.slane %v544_v53, 2  ;;  %v546_v55 = vpop.f32.mrb[9].mxu0 }
 0x93f   :  { %v555_v56 = vadd.f32 %v546_v55, %v1980_v29  ;;  %v548_v57 = vpop.f32.mrb[10].mxu0 }
 0x940   :  { %v554_v60 = vadd.f32 %v552_v54, %v1978_v28  ;;  %v549_v61 = vpop.f32.mrb[11].mxu0 }
 0x941   :  { %1758 = vtanh.f32 %v555_v56  ;;  %v1539_v6 = vmul.f32 -1.442695, %v555_v56 }
 0x942   :  { %1760 = vtanh.f32 %v554_v60  ;;  %v1538_v8 = vmul.f32 -1.442695, %v554_v60 }
 0x943   :  { %1762 = vpow2.f32 %v1539_v6 }
 0x944   :  { %1764 = vpow2.f32 %v1538_v8 }
 0x94b   :  { %v1759_v62 = vpop.eup %1758 }
 0x94c   :  { %v1761_v5 = vpop.eup %1760  ;;  %595 = vrot.lane.b32.xlu0 %v1759_v62, %s1844_s3 }
 0x94d   :  { %568 = vrot.lane.b32.xlu1 %v1761_v5, %s1844_s3  ;;  %v1763_v0 = vpop.eup %1762 }
 0x94e   :  { %v1765_v12 = vpop.eup %1764  ;;  %v586_v13 = vadd.f32 1.0, %v1763_v0 }
 0x94f   :  { %v559_v29 = vadd.f32 1.0, %v1765_v12 }
 0x950   :  { %1766 = vrcp.f32 %v586_v13 }
 0x951   :  { %1768 = vrcp.f32 %v559_v29 }
 0x95a   :  { %v1767_v28 = vpop.eup %1766 }
 0x95b   :  { %v1769_v15 = vpop.eup %1768  ;;  %v593_v21 = vmul.f32 %v1767_v28, %v591_v19 }
 0x95c   :  { %v566_v25 = vmul.f32 %v1769_v15, %v564_v20 }
 0x9be   :  { %v596_v14 = vpop.permute.xlu0 %595 }
 0x9bf   :  { %v598_v16 = vmul.f32 %v1767_v28, %v596_v14  ;;  %v569_v17 = vpop.permute.xlu1 %568 }
 0x9c0   :  { %v571_v18 = vmul.f32 %v1769_v15, %v569_v17 }
 0x9c1   :  { %600 = vrot.lane.b32.xlu0 %v598_v16, %s1845_s26 }
 0x9c2   :  { %573 = vrot.lane.b32.xlu1 %v571_v18, %s1845_s26 }
 0xa33   :  { %v601_v23 = vpop.permute.xlu0 %600 }
 0xa34   :  { %v2095_v26 = vadd.f32 %v601_v23, %v593_v21  ;;  %v574_v27 = vpop.permute.xlu1 %573 }
 0xa35   :  { %v2097_v30 = vadd.f32 %v574_v27, %v566_v25 }
 0xa36   :  { %1770 = vtanh.f32 %v2095_v26  ;;  %v707_v18 = vrot.slane %v2095_v26, 2 }
 0xa37   :  { %1772 = vtanh.f32 %v2097_v30  ;;  %v680_v16 = vrot.slane %v2097_v30, 6 }
 0xa40   :  { %v1771_v31 = vpop.eup %1770 }
 0xa41   :  { %v1773_v32 = vpop.eup %1772  ;;  %606 = vrot.lane.b32.xlu0 %v1771_v31, %s1844_s3 }
 0xa42   :  { %579 = vrot.lane.b32.xlu1 %v1773_v32, %s1844_s3 }
 0xab3   :  { %v607_v33 = vpop.permute.xlu0 %606 }
 0xab4   :  { %v609_v35 = vmul.f32 %v1767_v28, %v607_v33  ;;  %v580_v36 = vpop.permute.xlu1 %579 }
 0xab5   :  { %v582_v37 = vmul.f32 %v1769_v15, %v580_v36 }
 0xab6   :  { %v2104_v38 = vpack.i.bf16 %v609_v35, %v1114_v34  ;;  %v615_v39 = vrot.slane %v609_v35, 2 }
 0xab7   :  { %v1096_v41 = vrot.slane %v582_v37, 6  ;;  %611 = vrot.lane.b32.xlu0 %v582_v37, %s1845_s26 }
 0xab8   :  { %616 = vrot.lane.b32.xlu1 %v615_v39, %s1844_s3 }
 0xab9   :  { %v2109_v43 = vpack.i.bf16 %v1082_v40, %v1096_v41 }
 0xb29   :  { %v612_v45 = vpop.permute.xlu0 %611 }
 0xb2a   :  { %v617_v46 = vpop.permute.xlu1 %616 }
 0xb2b   :  { %v619_v47 = vsel %vm266_vm1, %v612_v45, %v617_v46 }
 0xb2c   :  { %v620_v50 = vpack.c.bf16 %v619_v47, %v619_v47 }
 0xb2e   :  { %v622_v49 = vrot.slane %v620_v50, 3 }
 0xb30   :  { %1540 = vmatmul.mubr.msk.bf16.vlgmr.msra.gmra.mrb[8].mxu1 %vm159_vm2, %v622_v49 }
 0xb31   :  { %860 = vmatpush1.bf16.msra.mxu1 %v1902_v2  ;;  %891 = vmatprep.mubr.bf16.mxu1 %v1842_v1 }
 0xb32   :  { %861 = vmatprep.subr.bf16.mxu1 %v1908_v3 }
 0xb35   :  { %862 = vmatpush1.bf16.msra.mxu1 %v1913_v4 }
 0xb36   :  { %863 = vmatprep.subr.bf16.mxu1 %v1926_v7 }
 0xb39   :  { %864 = vmatpush1.bf16.msra.mxu1 %v1935_v9 }
 0xb3a   :  { %865 = vmatprep.subr.bf16.mxu1 %v1942_v10 }
 0xb3d   :  { %866 = vmatpush1.bf16.msra.mxu1 %v1950_v11 }
 0xc03   :  { %v660_v48 = vpop.f32.mrb[8].mxu1 }
 0xc04   :  { %v667_v51 = vadd.f32 %v660_v48, %v1976_v24  ;;  %v662_v52 = vpop.f32.mrb[9].mxu1 }
 0xc05   :  { %v669_v53 = vrot.slane %v662_v52, 2  ;;  %v664_v54 = vpop.f32.mrb[10].mxu1 }
 0xc06   :  { %1774 = vtanh.f32 %v667_v51  ;;  %v665_v55 = vpop.f32.mrb[11].mxu1  ;;  %v1541_v61 = vmul.f32 -1.442695, %v667_v51 }
 0xc07   :  { %v671_v56 = vadd.f32 %v669_v53, %v1974_v22 }
 0xc09   :  { %1776 = vtanh.f32 %v671_v56  ;;  %v1542_v62 = vmul.f32 -1.442695, %v671_v56 }
 0xc0a   :  { %1778 = vpow2.f32 %v1541_v61 }
 0xc0b   :  { %1780 = vpow2.f32 %v1542_v62 }
 0xc10   :  { %v1775_v57 = vpop.eup %1774 }
 0xc11   :  { %684 = vrot.lane.b32.xlu1 %v1775_v57, %s1844_s3 }
 0xc13   :  { %v1777_v60 = vpop.eup %1776 }
 0xc14   :  { %711 = vrot.lane.b32.xlu0 %v1777_v60, %s1844_s3  ;;  %v1779_v5 = vpop.eup %1778 }
 0xc15   :  { %v1781_v6 = vpop.eup %1780  ;;  %v675_v8 = vadd.f32 1.0, %v1779_v5 }
 0xc16   :  { %v702_v0 = vadd.f32 1.0, %v1781_v6 }
 0xc17   :  { %1782 = vrcp.f32 %v675_v8 }
 0xc18   :  { %1784 = vrcp.f32 %v702_v0 }
 0xc21   :  { %v1783_v12 = vpop.eup %1782 }
 0xc22   :  { %v1785_v28 = vpop.eup %1784  ;;  %v682_v17 = vmul.f32 %v1783_v12, %v680_v16 }
 0xc23   :  { %v709_v21 = vmul.f32 %v1785_v28, %v707_v18 }
 0xc83   :  { %v685_v13 = vpop.permute.xlu1 %684 }
 0xc84   :  { %v687_v29 = vmul.f32 %v1783_v12, %v685_v13 }
 0xc86   :  { %689 = vrot.lane.b32.xlu1 %v687_v29, %s1845_s26  ;;  %v712_v14 = vpop.permute.xlu0 %711 }
 0xc87   :  { %v714_v15 = vmul.f32 %v1785_v28, %v712_v14 }
 0xc89   :  { %716 = vrot.lane.b32.xlu0 %v714_v15, %s1845_s26 }
 0xcf8   :  { %v690_v19 = vpop.permute.xlu1 %689 }
 0xcf9   :  { %v2129_v20 = vadd.f32 %v690_v19, %v682_v17 }
 0xcfb   :  { %1786 = vtanh.f32 %v2129_v20  ;;  %v717_v23 = vpop.permute.xlu0 %716  ;;  %v797_v57 = vrot.slane %v2129_v20, 6 }
 0xcfc   :  { %v2132_v25 = vadd.f32 %v717_v23, %v709_v21 }
 0xcfe   :  { %1788 = vtanh.f32 %v2132_v25  ;;  %v824_v60 = vrot.slane %v2132_v25, 2 }
 0xd05   :  { %v1787_v27 = vpop.eup %1786 }
 0xd06   :  { %695 = vrot.lane.b32.xlu1 %v1787_v27, %s1844_s3 }
 0xd08   :  { %v1789_v31 = vpop.eup %1788 }
 0xd09   :  { %722 = vrot.lane.b32.xlu0 %v1789_v31, %s1844_s3 }
 0xd78   :  { %v696_v30 = vpop.permute.xlu1 %695 }
 0xd79   :  { %v698_v32 = vmul.f32 %v1783_v12, %v696_v30 }
 0xd7b   :  { %727 = vrot.lane.b32.xlu0 %v698_v32, %s1845_s26  ;;  %v723_v26 = vpop.permute.xlu0 %722 }
 0xd7c   :  { %v2138_v33 = vmul.f32 %v1785_v28, %v723_v26 }
 0xd7e   :  { %v731_v34 = vrot.slane %v2138_v33, 6 }
 0xd80   :  { %732 = vrot.lane.b32.xlu1 %v731_v34, %s1844_s3 }
 0xded   :  { %v2144_v35 = vpop.permute.xlu0 %727 }
 0xdf2   :  { %v733_v36 = vpop.permute.xlu1 %732 }
 0xdf3   :  { %v735_v37 = vsel %vm266_vm1, %v2144_v35, %v733_v36 }
 0xdf4   :  { %v736_v39 = vpack.c.bf16 %v735_v37, %v735_v37 }
 0xdf6   :  { %1543 = vmatmul.mubr.msk.bf16.vlgmr.msra.gmra.mrb[12].mxu0 %vm159_vm2, %v736_v39 }
 0xdf7   :  { %979 = vmatpush1.bf16.msra.mxu0 %v1902_v2  ;;  %1010 = vmatprep.mubr.bf16.mxu0 %v1842_v1 }
 0xdf8   :  { %980 = vmatprep.subr.bf16.mxu0 %v1908_v3 }
 0xdfb   :  { %981 = vmatpush1.bf16.msra.mxu0 %v1913_v4 }
 0xdfc   :  { %982 = vmatprep.subr.bf16.mxu0 %v1926_v7 }
 0xdff   :  { %983 = vmatpush1.bf16.msra.mxu0 %v1935_v9 }
 0xe00   :  { %984 = vmatprep.subr.bf16.mxu0 %v1942_v10 }
 0xe03   :  { %985 = vmatpush1.bf16.msra.mxu0 %v1950_v11 }
 0xec9   :  { %v774_v40 = vpop.f32.mrb[12].mxu0 }
 0xeca   :  { %v782_v41 = vrot.slane %v774_v40, 6  ;;  %v776_v45 = vpop.f32.mrb[13].mxu0 }
 0xecb   :  { %v786_v46 = vrot.slane %v776_v45, 4  ;;  %v778_v47 = vpop.f32.mrb[14].mxu0 }
 0xecc   :  { %v784_v2 = vadd.f32 %v782_v41, %v1976_v24  ;;  %v779_v1 = vpop.f32.mrb[15].mxu0 }
 0xecd   :  { %v788_v3 = vadd.f32 %v786_v46, %v1974_v22 }
 0xece   :  { %1790 = vtanh.f32 %v784_v2  ;;  %v1544_v9 = vmul.f32 -1.442695, %v784_v2 }
 0xecf   :  { %1792 = vtanh.f32 %v788_v3  ;;  %v1545_v10 = vmul.f32 -1.442695, %v788_v3 }
 0xed0   :  { %1794 = vpow2.f32 %v1544_v9 }
 0xed1   :  { %1796 = vpow2.f32 %v1545_v10 }
 0xed8   :  { %v1791_v4 = vpop.eup %1790 }
 0xed9   :  { %v1793_v7 = vpop.eup %1792  ;;  %801 = vrot.lane.b32.xlu1 %v1791_v4, %s1844_s3 }
 0xeda   :  { %828 = vrot.lane.b32.xlu0 %v1793_v7, %s1844_s3  ;;  %v1795_v11 = vpop.eup %1794 }
 0xedb   :  { %v1797_v50 = vpop.eup %1796  ;;  %v792_v49 = vadd.f32 1.0, %v1795_v11 }
 0xedc   :  { %v819_v48 = vadd.f32 1.0, %v1797_v50 }
 0xedd   :  { %1798 = vrcp.f32 %v792_v49 }
 0xede   :  { %1800 = vrcp.f32 %v819_v48 }
 0xee7   :  { %v1799_v51 = vpop.eup %1798 }
 0xee8   :  { %v1801_v53 = vpop.eup %1800  ;;  %v799_v61 = vmul.f32 %v1799_v51, %v797_v57 }
 0xee9   :  { %v826_v5 = vmul.f32 %v1801_v53, %v824_v60 }
 0xf4b   :  { %v802_v52 = vpop.permute.xlu1 %801 }
 0xf4c   :  { %v804_v54 = vmul.f32 %v1799_v51, %v802_v52  ;;  %v829_v55 = vpop.permute.xlu0 %828 }
 0xf4d   :  { %v831_v56 = vmul.f32 %v1801_v53, %v829_v55 }
 0xf4e   :  { %806 = vrot.lane.b32.xlu1 %v804_v54, %s1845_s26 }
 0xf4f   :  { %833 = vrot.lane.b32.xlu0 %v831_v56, %s1845_s26 }
 0xfc0   :  { %v807_v62 = vpop.permute.xlu1 %806 }
 0xfc1   :  { %v809_v6 = vadd.f32 %v807_v62, %v799_v61  ;;  %v834_v8 = vpop.permute.xlu0 %833 }
 0xfc2   :  { %v836_v0 = vadd.f32 %v834_v8, %v826_v5  ;;  %v1088_v5 = vrot.slane %v2068_v42, 4 }
 0xfc3   :  { %1802 = vtanh.f32 %v809_v6  ;;  %v916_v11 = vrot.slane %v809_v6, 6 }
 0xfc4   :  { %1804 = vtanh.f32 %v836_v0  ;;  %v943_v50 = vrot.slane %v836_v0, 2 }
 0xfcd   :  { %v1803_v12 = vpop.eup %1802 }
 0xfce   :  { %v1805_v13 = vpop.eup %1804  ;;  %812 = vrot.lane.b32.xlu1 %v1803_v12, %s1844_s3 }
 0xfcf   :  { %839 = vrot.lane.b32.xlu0 %v1805_v13, %s1844_s3 }
0x1040   :  { %v813_v29 = vpop.permute.xlu1 %812 }
0x1041   :  { %v2167_v28 = vmul.f32 %v1799_v51, %v813_v29  ;;  %v840_v14 = vpop.permute.xlu0 %839 }
0x1042   :  { %v2169_v15 = vmul.f32 %v1801_v53, %v840_v14 }
0x1043   :  { %844 = vrot.lane.b32.xlu0 %v2167_v28, %s1845_s26 }
0x1044   :  { %v848_v16 = vrot.slane %v2169_v15, 2 }
0x1046   :  { %849 = vrot.lane.b32.xlu1 %v848_v16, %s1844_s3 }
0x10b5   :  { %v845_v17 = vpop.permute.xlu0 %844 }
0x10b8   :  { %v850_v18 = vpop.permute.xlu1 %849 }
0x10b9   :  { %v852_v19 = vsel %vm266_vm1, %v845_v17, %v850_v18 }
0x10ba   :  { %v853_v20 = vpack.c.bf16 %v852_v19, %v852_v19 }
0x10bc   :  { %v855_v21 = vrot.slane %v853_v20, 1 }
0x10be   :  { %1546 = vmatmul.mubr.msk.bf16.vlgmr.msra.gmra.mrb[12].mxu1 %vm159_vm2, %v855_v21 }
0x1191   :  { %v893_v23 = vpop.f32.mrb[12].mxu1 }
0x1192   :  { %v901_v25 = vrot.slane %v893_v23, 4  ;;  %v895_v27 = vpop.f32.mrb[13].mxu1 }
0x1193   :  { %v905_v31 = vrot.slane %v895_v27, 6  ;;  %v897_v30 = vpop.f32.mrb[14].mxu1 }
0x1194   :  { %v903_v32 = vadd.f32 %v901_v25, %v1976_v24  ;;  %v898_v26 = vpop.f32.mrb[15].mxu1 }
0x1195   :  { %v907_v36 = vadd.f32 %v905_v31, %v1974_v22 }
0x1196   :  { %1806 = vtanh.f32 %v903_v32  ;;  %v1547_v40 = vmul.f32 -1.442695, %v903_v32 }
0x1197   :  { %1808 = vtanh.f32 %v907_v36  ;;  %v1548_v41 = vmul.f32 -1.442695, %v907_v36 }
0x1198   :  { %1810 = vpow2.f32 %v1547_v40 }
0x1199   :  { %1812 = vpow2.f32 %v1548_v41 }
0x11a0   :  { %v1807_v37 = vpop.eup %1806 }
0x11a1   :  { %v1809_v39 = vpop.eup %1808  ;;  %920 = vrot.lane.b32.xlu1 %v1807_v37, %s1844_s3 }
0x11a2   :  { %947 = vrot.lane.b32.xlu0 %v1809_v39, %s1844_s3  ;;  %v1811_v45 = vpop.eup %1810 }
0x11a3   :  { %v1813_v46 = vpop.eup %1812  ;;  %v911_v47 = vadd.f32 1.0, %v1811_v45 }
0x11a4   :  { %v938_v2 = vadd.f32 1.0, %v1813_v46 }
0x11a5   :  { %1814 = vrcp.f32 %v911_v47 }
0x11a6   :  { %1816 = vrcp.f32 %v938_v2 }
0x11af   :  { %v1815_v1 = vpop.eup %1814 }
0x11b0   :  { %v1817_v4 = vpop.eup %1816  ;;  %v918_v49 = vmul.f32 %v1815_v1, %v916_v11  ;;  %v1679_v11 = vld [vmem:[%s2355_s4] sm:$0xff]  }
0x11b1   :  { %v945_v51 = vmul.f32 %v1817_v4, %v943_v50 }
0x1213   :  { %v921_v3 = vpop.permute.xlu1 %920 }
0x1214   :  { %v923_v7 = vmul.f32 %v1815_v1, %v921_v3  ;;  %v948_v9 = vpop.permute.xlu0 %947 }
0x1215   :  { %v950_v10 = vmul.f32 %v1817_v4, %v948_v9 }
0x1216   :  { %925 = vrot.lane.b32.xlu1 %v923_v7, %s1845_s26 }
0x1217   :  { %952 = vrot.lane.b32.xlu0 %v950_v10, %s1845_s26  ;;  %v1678_v10 = vld [vmem:[%s2355_s4 + $0x40] sm:$0xff]  }
0x1218   :  { %1588 = vmatprep.subr.bf16.mxu1 %v1678_v10 }
0x1219   :  { %1589 = vmatpush3.bf16.msra.mxu1 %v1679_v11 }
0x1288   :  { %v926_v48 = vpop.permute.xlu1 %925 }
0x1289   :  { %v928_v52 = vadd.f32 %v926_v48, %v918_v49  ;;  %v953_v53 = vpop.permute.xlu0 %952  ;;  %v1680_v49 = vld [vmem:[%s2355_s4 + $0x48] sm:$0xff]  }
0x128a   :  { %v955_v54 = vadd.f32 %v953_v53, %v945_v51  ;;  %v1681_v51 = vld [vmem:[%s2355_s4 + $0xc0] sm:$0xff]   ;;  %1590 = vmatprep.subr.bf16.mxu1 %v1680_v49 }
0x128b   :  { %1818 = vtanh.f32 %v928_v52  ;;  %v1032_v47 = vrot.slane %v928_v52, 6  ;;  %v1682_v52 = vld [vmem:[%s2355_s4 + $0x8] sm:$0xff]   ;;  %1610 = vmatprep.subr.bf16.mxu0 %v1681_v51  ;;  %v1683_v53 = vld [vmem:[%s2355_s4 + $0x80] sm:$0xff]  }
0x128c   :  { %1820 = vtanh.f32 %v955_v54  ;;  %v1059_v46 = vrot.slane %v955_v54, 2  ;;  %v1684_v54 = vld [vmem:[%s2355_s4 + $0x50] sm:$0xff]   ;;  %1591 = vmatpush3.bf16.msra.mxu1 %v1682_v52 }
0x128d   :  { %1592 = vmatprep.subr.bf16.mxu1 %v1684_v54 }
0x1295   :  { %v1819_v55 = vpop.eup %1818 }
0x1296   :  { %v1821_v56 = vpop.eup %1820  ;;  %931 = vrot.lane.b32.xlu1 %v1819_v55, %s1844_s3  ;;  %v1685_v55 = vld [vmem:[%s2355_s4 + $0xc8] sm:$0xff]  }
0x1297   :  { %958 = vrot.lane.b32.xlu0 %v1821_v56, %s1844_s3  ;;  %v1686_v56 = vld [vmem:[%s2355_s4 + $0x10] sm:$0xff]  }
0x1298   :  { %1593 = vmatpush3.bf16.msra.mxu1 %v1686_v56 }
0x1308   :  { %v932_v57 = vpop.permute.xlu1 %931 }
0x1309   :  { %v934_v60 = vmul.f32 %v1815_v1, %v932_v57  ;;  %v959_v61 = vpop.permute.xlu0 %958  ;;  %v1687_v57 = vld [vmem:[%s2355_s4 + $0x88] sm:$0xff]  }
0x130a   :  { %v2185_v62 = vmul.f32 %v1817_v4, %v959_v61  ;;  %v1689_v61 = vld [vmem:[%s2355_s4 + $0xd0] sm:$0xff]  }
0x130b   :  { %v1110_v6 = vrot.slane %v934_v60, 4  ;;  %963 = vrot.lane.b32.xlu0 %v934_v60, %s1845_s26  ;;  %v1688_v60 = vld [vmem:[%s2355_s4 + $0x58] sm:$0xff]  }
0x130c   :  { %v967_v8 = vrot.slane %v2185_v62, 6  ;;  %1594 = vmatprep.subr.bf16.mxu1 %v1688_v60 }
0x130d   :  { %v2190_v0 = vpack.i.bf16 %v1110_v6, %v1088_v5  ;;  %v1690_v5 = vld [vmem:[%s2355_s4 + $0x18] sm:$0xff]   ;;  %v1691_v6 = vld [vmem:[%s2355_s4 + $0x90] sm:$0xff]  }
0x130e   :  { %968 = vrot.lane.b32.xlu1 %v967_v8, %s1844_s3  ;;  %v1692_v8 = vld [vmem:[%s2355_s4 + $0x60] sm:$0xff]   ;;  %1595 = vmatpush3.bf16.msra.mxu1 %v1690_v5 }
0x130f   :  { %1596 = vmatprep.subr.bf16.mxu1 %v1692_v8 }
0x137d   :  { %v964_v12 = vpop.permute.xlu0 %963 }
0x1380   :  { %v969_v13 = vpop.permute.xlu1 %968 }
0x1381   :  { %v971_v29 = vsel %vm266_vm1, %v964_v12, %v969_v13  ;;  %v1695_v12 = vld [vmem:[%s2355_s4 + $0x98] sm:$0xff]   ;;  %v1696_v13 = vld [vmem:[%s2355_s4 + $0x68] sm:$0xff]  }
0x1382   :  { %v972_v14 = vpack.c.bf16 %v971_v29, %v971_v29  ;;  %v1697_v29 = vld [vmem:[%s2355_s4 + $0xe0] sm:$0xff]  }
0x1384   :  { %v974_v16 = vrot.slane %v972_v14, 2  ;;  %v1698_v14 = vld [vmem:[%s2355_s4 + $0x28] sm:$0xff]  }
0x1386   :  { %1549 = vmatmul.mubr.msk.bf16.vlgmr.msra.gmra.mrb[16].mxu0 %vm159_vm2, %v974_v16  ;;  %v1699_v16 = vld [vmem:[%s2355_s4 + $0xa0] sm:$0xff]  }
0x1387   :  { %1611 = vmatpush3.bf16.msra.mxu0 %v1683_v53 }
0x1388   :  { %1612 = vmatprep.subr.bf16.mxu0 %v1685_v55  ;;  %v1108_v55 = vrot.slane %v2070_v44, 2  ;;  %v13_v44 = vstv %s2356_s7 }
0x1389   :  { %14 = vst [vmem:[#allocation2] sm:$0x1] %v13_v44 }
0x138b   :  { %1613 = vmatpush3.bf16.msra.mxu0 %v1687_v57 }
0x138c   :  { %1614 = vmatprep.subr.bf16.mxu0 %v1689_v61 }
0x138f   :  { %1615 = vmatpush3.bf16.msra.mxu0 %v1691_v6 }
0x1459   :  { %v1012_v17 = vpop.f32.mrb[16].mxu0 }
0x145a   :  { %v1020_v18 = vrot.slane %v1012_v17, 2  ;;  %v1014_v42 = vpop.f32.mrb[17].mxu0  ;;  %v1700_v17 = vld [vmem:[%s2355_s4 + $0x70] sm:$0xff]  }
0x145b   :  { %v1023_v19 = vadd.f32 %v1014_v42, %v1974_v22  ;;  %v1016_v20 = vpop.f32.mrb[18].mxu0  ;;  %v1702_v42 = vld [vmem:[%s2355_s4 + $0x30] sm:$0xff]  }
0x145c   :  { %v1022_v21 = vadd.f32 %v1020_v18, %v1976_v24  ;;  %v1017_v23 = vpop.f32.mrb[19].mxu0  ;;  %v1701_v18 = vld [vmem:[%s2355_s4 + $0xe8] sm:$0xff]   ;;  %v1704_v20 = vld [vmem:[%s2355_s4 + $0x78] sm:$0xff]  }
0x145d   :  { %1822 = vtanh.f32 %v1023_v19  ;;  %v1551_v31 = vmul.f32 -1.442695, %v1023_v19  ;;  %v1703_v19 = vld [vmem:[%s2355_s4 + $0xa8] sm:$0xff]   ;;  %v1706_v23 = vld [vmem:[%s2355_s4 + $0x38] sm:$0xff]  }
0x145e   :  { %1824 = vtanh.f32 %v1022_v21  ;;  %v1550_v30 = vmul.f32 -1.442695, %v1022_v21  ;;  %v1705_v21 = vld [vmem:[%s2355_s4 + $0xf0] sm:$0xff]  }
0x145f   :  { %1826 = vpow2.f32 %v1551_v31  ;;  %v1709_v31 = vld [vmem:[%s2355_s4 + $0xb8] sm:$0xff]  }
0x1460   :  { %1828 = vpow2.f32 %v1550_v30 }
0x1467   :  { %v1823_v25 = vpop.eup %1822 }
0x1468   :  { %v1825_v27 = vpop.eup %1824  ;;  %1063 = vrot.lane.b32.xlu1 %v1823_v25, %s1844_s3  ;;  %v1707_v25 = vld [vmem:[%s2355_s4 + $0xb0] sm:$0xff]  }
0x1469   :  { %1036 = vrot.lane.b32.xlu0 %v1825_v27, %s1844_s3  ;;  %v1827_v32 = vpop.eup %1826  ;;  %v1708_v27 = vld [vmem:[%s2355_s4 + $0xf8] sm:$0xff]  }
0x146a   :  { %v1829_v26 = vpop.eup %1828  ;;  %v1054_v36 = vadd.f32 1.0, %v1827_v32  ;;  %v1092_v32 = vrot.slane %v2169_v15, 4 }
0x146b   :  { %v1027_v22 = vadd.f32 1.0, %v1829_v26 }
0x146c   :  { %1830 = vrcp.f32 %v1054_v36 }
0x146d   :  { %1832 = vrcp.f32 %v1027_v22 }
0x1476   :  { %v2199_v24 = vpop.eup %1830 }
0x1477   :  { %v2201_v39 = vpop.eup %1832  ;;  %v1061_v2 = vmul.f32 %v2199_v24, %v1059_v46 }
0x1478   :  { %v1034_v3 = vmul.f32 %v2201_v39, %v1032_v47 }
0x14da   :  { %v1064_v37 = vpop.permute.xlu1 %1063 }
0x14db   :  { %v1066_v40 = vmul.f32 %v2199_v24, %v1064_v37  ;;  %v1037_v41 = vpop.permute.xlu0 %1036 }
0x14dc   :  { %v1039_v45 = vmul.f32 %v2201_v39, %v1037_v41 }
0x14dd   :  { %1068 = vrot.lane.b32.xlu1 %v1066_v40, %s1845_s26  ;;  %v1104_v40 = vrot.slane %v2167_v28, 2  ;;  %v1086_v28 = vrot.slane %v2185_v62, 2 }
0x14de   :  { %1041 = vrot.lane.b32.xlu0 %v1039_v45, %s1845_s26 }
0x154f   :  { %v1069_v1 = vpop.permute.xlu1 %1068 }
0x1550   :  { %v1071_v4 = vadd.f32 %v1069_v1, %v1061_v2  ;;  %v1042_v7 = vpop.permute.xlu0 %1041 }
0x1551   :  { %v1044_v9 = vadd.f32 %v1042_v7, %v1034_v3 }
0x1552   :  { %1834 = vtanh.f32 %v1071_v4 }
0x1553   :  { %1836 = vtanh.f32 %v1044_v9 }
0x155c   :  { %v1835_v50 = vpop.eup %1834 }
0x155d   :  { %v1837_v48 = vpop.eup %1836  ;;  %1074 = vrot.lane.b32.xlu1 %v1835_v50, %s1844_s3 }
0x155e   :  { %1047 = vrot.lane.b32.xlu0 %v1837_v48, %s1844_s3 }
0x1562   :  { %1638 = vrot.lane.b32.xlu0 %v2190_v0, %s1845_s26  ;;  %s1846_s26 = smov 96   ;;  %v1694_v0 = vld [vmem:[%s2355_s4 + $0x20] sm:$0xff]  }
0x1563   :  { %1597 = vmatpush3.bf16.msra.mxu1 %v1694_v0 }
0x1564   :  { %1598 = vmatprep.subr.bf16.mxu1 %v1696_v13 }
0x1566   :  { %1643 = vrot.lane.b32.xlu0 %v2109_v43, %s1846_s26  ;;  %v1693_v43 = vld [vmem:[%s2355_s4 + $0xd8] sm:$0xff]  }
0x1567   :  { %1616 = vmatprep.subr.bf16.mxu0 %v1693_v43  ;;  %1599 = vmatpush3.bf16.msra.mxu1 %v1698_v14 }
0x1568   :  { %1617 = vmatpush3.bf16.msra.mxu0 %v1695_v12  ;;  %1600 = vmatprep.subr.bf16.mxu1 %v1700_v17 }
0x1569   :  { %1618 = vmatprep.subr.bf16.mxu0 %v1697_v29 }
0x156b   :  { %1601 = vmatpush3.bf16.msra.mxu1 %v1702_v42  ;;  %v1585_v42 = vld [vmem:[%s2358_s6] ss:$0 sm:$0xff] }
0x156c   :  { %1619 = vmatpush3.bf16.msra.mxu0 %v1699_v16  ;;  %1602 = vmatprep.subr.bf16.mxu1 %v1704_v20 }
0x156d   :  { %1620 = vmatprep.subr.bf16.mxu0 %v1701_v18 }
0x156f   :  { %1603 = vmatpush3.bf16.msra.mxu1 %v1706_v23  ;;  %v1586_v23 = vld [vmem:[#allocation2] ss:$0 sm:$0xff] }
0x1570   :  { %1621 = vmatpush3.bf16.msra.mxu0 %v1703_v19 }
0x1571   :  { %1622 = vmatprep.subr.bf16.mxu0 %v1705_v21 }
0x1574   :  { %1623 = vmatpush3.bf16.msra.mxu0 %v1707_v25 }
0x1575   :  { %1624 = vmatprep.subr.bf16.mxu0 %v1708_v27 }
0x1578   :  { %1625 = vmatpush3.bf16.msra.mxu0 %v1709_v31 }
0x15cf   :  { %v1075_v30 = vpop.permute.xlu1 %1074 }
0x15d0   :  { %v1077_v26 = vmul.f32 %v2199_v24, %v1075_v30  ;;  %v1048_v36 = vpop.permute.xlu0 %1047 }
0x15d1   :  { %v1050_v22 = vmul.f32 %v2201_v39, %v1048_v36 }
0x15d2   :  { %v1647_v37 = vpack.i.bf16 %v1077_v26, %v1092_v32 }
0x15d3   :  { %v1119_v41 = vrot.slane %v1050_v22, 6 }
0x15d4   :  { %1648 = vrot.lane.b32.xlu1 %v1647_v37, %s1844_s3  ;;  %v1639_v46 = vpop.permute.xlu0 %1638 }
0x15d5   :  { %v1657_v45 = vpack.i.bf16 %v1104_v40, %v1119_v41  ;;  %v1640_v24 = vunpack.i.l.bf16 %v1639_v46  ;;  %v1641_v10 = vunpack.i.h.bf16 %v1639_v46 }
0x15d7   :  { %1658 = vrot.lane.b32.xlu0 %v1657_v45, %s1846_s26 }
0x15d8   :  { %1653 = vrot.lane.b32.xlu1 %v2104_v38, %s1844_s3  ;;  %v1644_v15 = vpop.permute.xlu0 %1643 }
0x15d9   :  { %v1646_v3 = vunpack.i.h.bf16 %v1644_v15  ;;  %v1645_v39 = vunpack.i.l.bf16 %v1644_v15 }
0x1646   :  { %v1649_v47 = vpop.permute.xlu1 %1648 }
0x1647   :  { %v1651_v2 = vunpack.i.h.bf16 %v1649_v47  ;;  %v1650_v1 = vunpack.i.l.bf16 %v1649_v47 }
0x1649   :  { %v1124_v4 = vsel %vm266_vm1, %v2003_v63, %v1651_v2  ;;  %v1128_v7 = vsel %vm266_vm1, %v1640_v24, %v1650_v1  ;;  %v1659_v9 = vpop.permute.xlu0 %1658 }
0x164a   :  { %v1125_v38 = vsel %vm159_vm2, %v1124_v4, %v1646_v3  ;;  %v1654_v11 = vpop.permute.xlu1 %1653  ;;  %v1129_v50 = vsel %vm159_vm2, %v1128_v7, %v1645_v39  ;;  %v1661_v52 = vunpack.i.h.bf16 %v1659_v9  ;;  %v1660_v53 = vunpack.i.l.bf16 %v1659_v9 }
0x164b   :  { %v1656_v49 = vunpack.i.h.bf16 %v1654_v11  ;;  %v1655_v48 = vunpack.i.l.bf16 %v1654_v11  ;;  %v1130_v51 = vsel %vm1126_vm3, %v1129_v50, %v731_v34  ;;  %v1127_v62 = vsel %vm1126_vm3, %v1125_v38, %v1086_v28 }
0x164c   :  { %v1138_v63 = vpack.c.bf16 %v1130_v51, %v1130_v51  ;;  %v1137_v54 = vpack.c.bf16 %v1127_v62, %v1127_v62 }
0x164d   :  { %v1131_v56 = vsel %vm266_vm1, %v2144_v35, %v1656_v49  ;;  %v1134_v57 = vsel %vm266_vm1, %v1641_v10, %v1655_v48 }
0x164e   :  { %v1132_v60 = vsel %vm159_vm2, %v1131_v56, %v1661_v52  ;;  %1436 = vmatprep.mubr.bf16.mxu1 %v1138_v63  ;;  %v1135_v33 = vsel %vm159_vm2, %v1134_v57, %v1660_v53 }
0x164f   :  { %1437 = vmatmul.mubr.bf16.vlgmr.msra.gmra.mrb[16].mxu1 %v1137_v54  ;;  %v1136_v34 = vsel %vm1126_vm3, %v1135_v33, %v262_v59  ;;  %v1133_v61 = vsel %vm1126_vm3, %v1132_v60, %v1108_v55 }
0x1650   :  { %v1140_v5 = vpack.c.bf16 %v1136_v34, %v1136_v34  ;;  %v1139_v6 = vpack.c.bf16 %v1133_v61, %v1133_v61 }
0x1652   :  { %1476 = vmatprep.mubr.bf16.mxu0 %v1140_v5 }
0x1653   :  { %1477 = vmatmul.mubr.bf16.vlgmr.msra.gmra.mrb[20].mxu0 %v1139_v6 }
0x1722   :  { %v1604_v35 = vpop.f32.mrb[16].mxu1 }
0x1723   :  { %v1605_v8 = vpop.f32.mrb[17].mxu1 }
0x1724   :  { %v1606_v43 = vadd.f32 %v1605_v8, %v1604_v35  ;;  %v1607_v0 = vpop.f32.mrb[18].mxu1 }
0x1725   :  { %v1608_v59 = vpop.f32.mrb[19].mxu1 }
0x1726   :  { %v1626_v12 = vpop.f32.mrb[20].mxu0  ;;  %v1439_v29 = vadd.f32 %v1606_v43, %v1552_v58 }
0x1727   :  { %v1627_v13 = vpop.f32.mrb[21].mxu0 }
0x1728   :  { %v1628_v14 = vadd.f32 %v1627_v13, %v1626_v12  ;;  %v1629_v16 = vpop.f32.mrb[22].mxu0 }
0x1729   :  { %v1630_v17 = vpop.f32.mrb[23].mxu0 }
0x172a   :  { %v1479_v18 = vadd.f32 %v1628_v14, %v1439_v29 }
0x172c   :  { %v1484_v19 = vmax.f32 %v1479_v18, 0.0 }
0x172e   :  { %v1492_v20 = vmul.f32 %v1585_v42, %v1484_v19 }
0x1730   :  { %v1494_v21 = vsel %vm1493_vm4, %v1492_v20, 0.0 }
0x1731   :  { %1495 = vadd.xlane.f32.xlu1 %v1494_v21 }
0x17be   :  { %v1496_v25 = vpop.xlane.xlu1 %1495 }
0x17bf   :  { %v1504_v27 = vadd.f32 %v1586_v23, %v1496_v25 }
0x17c1   :  { %v1587_v31 = vmul.f32 -1.442695, %v1504_v27 }
0x17c3   :  { %1838 = vpow2.f32 %v1587_v31 }
0x17cd   :  { %v1839_v30 = vpop.eup %1838 }
0x17ce   :  { %v1508_v32 = vadd.f32 1.0, %v1839_v30 }
0x17d0   :  { %1840 = vrcp.f32 %v1508_v32 }
0x17da   :  { %v1841_v26 = vpop.eup %1840 }
0x17db   :  { %1512 = vst.msk [vmem:[%s2359_s8] sm:$0x3] %vm1511_vm5, %v1841_v26 }

</bundles_post_ra>
